<compile_context>
chip_gen: v5e
topology: v5e:2x2
jax: 0.10.0
libtpu: 0.0.40
codegen_flags: <defaults>
</compile_context>

<pallas_src>
import jax
import jax.numpy as jnp
from jax.experimental import pallas as pl
from jax.experimental.pallas import tpu as pltpu


def _round_up(x, m):
    return ((x + m - 1) // m) * m


def _num_tc_splits():
    """Best-effort: 2-way N split only on v7x (2 TensorCores per chip).
    v5e/v6e have a single TensorCore, where extra grid steps are pure overhead."""
    try:
        kind = jax.devices()[0].device_kind.lower()
    except Exception:
        return 1
    return 2 if "v7" in kind else 1


# ----------------------------- kernels -----------------------------

def _fused_linear_kernel(x_ref, wt_ref, b_ref, o_ref):
    # x_ref : (tm, Kp)  VMEM  activation panel (whole reduction resident)
    # wt_ref: (Kp, tn)  VMEM  pre-transposed (bf16) weight panel, resident
    # b_ref : (1,  tn)  VMEM  f32 bias slice
    # o_ref : (tm, tn)  VMEM  f32 logits tile
    lhs = x_ref[...]
    if lhs.dtype != wt_ref.dtype:
        lhs = lhs.astype(wt_ref.dtype)          # bf16 weights -> native bf16 MXU pass
    acc = jnp.dot(lhs, wt_ref[...], preferred_element_type=jnp.float32)
    o_ref[...] = (acc + b_ref[...]).astype(o_ref.dtype)


def _tiled_linear_kernel(x_ref, wt_ref, b_ref, o_ref, acc_ref):
    # General fallback when the reduction (K) axis must be tiled.
    k = pl.program_id(2)

    @pl.when(k == 0)
    def _():
        acc_ref[...] = jnp.zeros_like(acc_ref)

    lhs = x_ref[...]
    if lhs.dtype != wt_ref.dtype:
        lhs = lhs.astype(wt_ref.dtype)
    acc_ref[...] += jnp.dot(lhs, wt_ref[...], preferred_element_type=jnp.float32)

    @pl.when(k == pl.num_programs(2) - 1)
    def _():
        o_ref[...] = (acc_ref[...] + b_ref[...]).astype(o_ref.dtype)


# --------------------------- preparation ---------------------------

def prepare_linear_params(weight, bias, *, param_dtype=jnp.bfloat16):
    """One-time (per frozen probe) prep: transpose weight to (dim, num_labels),
    pad labels to a lane multiple, cast weight to bf16. Hoist out of the
    per-forward path."""
    num_labels, dim = weight.shape
    Lp = _round_up(num_labels, 128)              # 1000 -> 1024, lane-dense output
    Kp = _round_up(dim, 128)                     # 384 stays 384
    wt = jnp.zeros((Kp, Lp), dtype=param_dtype)
    wt = wt.at[:dim, :num_labels].set(weight.T.astype(param_dtype))
    b2 = jnp.zeros((1, Lp), dtype=jnp.float32)
    b2 = b2.at[0, :num_labels].set(bias.astype(jnp.float32))
    return wt, b2


# ----------------------------- forward -----------------------------

def linear_head_forward(x, wt_padded, b_padded, num_labels, *,
                        max_tm=256, max_resident_weight_bytes=8 * 1024 * 1024):
    """x: (B, ...) frozen features; wt_padded: (Kp, Lp); b_padded: (1, Lp)."""
    B = x.shape[0]
    x_flat = x.reshape(B, -1)                    # == torch .view(B, -1)
    dim = x_flat.shape[1]
    Kp, Lp = wt_padded.shape
    assert Kp >= dim and Lp >= num_labels

    # --- M tiling: avoid materializing a padded x copy whenever possible. ---
    if B <= max_tm:
        tm, Mp = B, B                            # single full-extent M block
    else:
        tm = max_tm
        Mp = _round_up(B, tm)

    need_pad = (Mp != B) or (Kp != dim)
    if need_pad:
        x_p = jnp.zeros((Mp, Kp), dtype=x_flat.dtype)
        x_p = x_p.at[:B, :dim].set(x_flat)
    else:
        x_p = x_flat                             # no extra HBM pass over x

    n_m = Mp // tm

    # --- N tiling: fully collapsed on single-TC chips (v5e/v6e); 2-way split
    #     on v7x only when M does not already give both cores separate tiles.
    n_n = 1
    if n_m < 2:
        splits = _num_tc_splits()
        if splits > 1 and Lp % (128 * splits) == 0:
            n_n = splits
    tn = Lp // n_n

    itemsize_x = jnp.dtype(x_p.dtype).itemsize
    out_dtype = x_flat.dtype
    w_bytes = Kp * Lp * jnp.dtype(wt_padded.dtype).itemsize

    if w_bytes <= max_resident_weight_bytes:
        # Fused fast path: resident weight panel, N outermost so each weight
        # panel is fetched from HBM exactly once; no K axis, no scratch.
        cost = pl.CostEstimate(
            flops=2 * Mp * Kp * Lp,
            transcendentals=0,
            bytes_accessed=(itemsize_x * Mp * Kp + w_bytes
                            + jnp.dtype(out_dtype).itemsize * Mp * Lp + 4 * Lp),
        )
        out = pl.pallas_call(
            _fused_linear_kernel,
            out_shape=jax.ShapeDtypeStruct((Mp, Lp), out_dtype),
            grid_spec=pltpu.PrefetchScalarGridSpec(
                num_scalar_prefetch=0,
                grid=(n_n, n_m),                               # N outer, M inner
                in_specs=[
                    pl.BlockSpec((tm, Kp), lambda j, i: (i, 0)),   # x panel
                    pl.BlockSpec((Kp, tn), lambda j, i: (0, j)),   # resident W.T
                    pl.BlockSpec((1, tn), lambda j, i: (0, j)),    # bias slice
                ],
                out_specs=pl.BlockSpec((tm, tn), lambda j, i: (i, j)),
            ),
            compiler_params=pltpu.CompilerParams(
                dimension_semantics=("parallel", "parallel"),
                # Footprint is a few MiB; 32 MiB is the v7x default scoped
                # limit and well inside v5e/v6e (128 MiB) / v7x (64 MiB).
                vmem_limit_bytes=32 * 1024 * 1024,
            ),
            cost_estimate=cost,
        )(x_p, wt_padded, b_padded)
    else:
        # Fallback for very large embed dims: classic K-tiled accumulator.
        tk = 512 if Kp % 512 == 0 else 128
        tn_f = 512 if Lp % 512 == 0 else 128
        cost = pl.CostEstimate(
            flops=2 * Mp * Kp * Lp,
            transcendentals=0,
            bytes_accessed=(itemsize_x * Mp * Kp + n_m * w_bytes
                            + jnp.dtype(out_dtype).itemsize * Mp * Lp + 4 * Lp),
        )
        out = pl.pallas_call(
            _tiled_linear_kernel,
            out_shape=jax.ShapeDtypeStruct((Mp, Lp), out_dtype),
            grid_spec=pltpu.PrefetchScalarGridSpec(
                num_scalar_prefetch=0,
                grid=(Lp // tn_f, n_m, Kp // tk),              # K (reduction) last
                in_specs=[
                    pl.BlockSpec((tm, tk), lambda j, i, k: (i, k)),
                    pl.BlockSpec((tk, tn_f), lambda j, i, k: (k, j)),
                    pl.BlockSpec((1, tn_f), lambda j, i, k: (0, j)),
                ],
                out_specs=pl.BlockSpec((tm, tn_f), lambda j, i, k: (i, j)),
                scratch_shapes=[pltpu.VMEM((tm, tn_f), jnp.float32)],
            ),
            compiler_params=pltpu.CompilerParams(
                dimension_semantics=("parallel", "parallel", "arbitrary"),
                vmem_limit_bytes=32 * 1024 * 1024,
            ),
            cost_estimate=cost,
        )(x_p, wt_padded, b_padded)

    return out[:B, :num_labels]


def make_linear_classifier(weight, bias, *, param_dtype=jnp.bfloat16):
    """Factory matching LinearClassifier: prepares the frozen probe params
    ONCE (transpose + pad + bf16 cast) and returns a forward(x) closure."""
    num_labels, _ = weight.shape
    wt_padded, b_padded = prepare_linear_params(weight, bias,
                                                param_dtype=param_dtype)

    def forward(x):
        return linear_head_forward(x, wt_padded, b_padded, num_labels)

    return forward


if __name__ == "__main__":
    key = jax.random.PRNGKey(0)
    k_x, k_w = jax.random.split(key)

    # dino_vits8 embed_dim = 384 features feeding a Linear(384, 1000) probe.
    B = 2
    embed_dim = 384
    num_labels = 1000        # exercises lane padding 1000 -> 1024

    # Frozen backbone features (stand-in for self.model(x) output).
    x = jax.random.normal(k_x, (B, embed_dim), dtype=jnp.float32)

    # LinearClassifier.__init__: weight ~ N(0, 0.01), bias = 0.
    weight = 0.01 * jax.random.normal(k_w, (num_labels, embed_dim),
                                      dtype=jnp.float32)
    bias = jnp.zeros((num_labels,), dtype=jnp.float32)

    forward = make_linear_classifier(weight, bias)   # one-time param prep
    out = forward(x)
    jax.block_until_ready(out)

    # Reference: same bf16 parameter/activation rounding, f32 accumulate.
    w_ref = weight.astype(jnp.bfloat16).astype(jnp.float32)
    x_ref = x.astype(jnp.bfloat16).astype(jnp.float32)
    ref = x_ref @ w_ref.T + bias

    assert out.shape == (B, num_labels)
    err = float(jnp.max(jnp.abs(out - ref)))
    assert jnp.allclose(out, ref, atol=2e-3, rtol=2e-3), err

    print("KERNEL_OK")
</pallas_src>

<mosaic_0001>
module attributes {stable_mosaic.version = 11 : i64} {
  func.func @_fused_linear_kernel(%arg0: i32, %arg1: i32, %arg2: memref<2x384xf32, #tpu.memory_space<vmem>>, %arg3: memref<384x1024xbf16, #tpu.memory_space<vmem>>, %arg4: memref<1x1024xf32, #tpu.memory_space<vmem>>, %arg5: memref<2x1024xf32, #tpu.memory_space<vmem>>) attributes {dimension_semantics = [#tpu.dimension_semantics<parallel>, #tpu.dimension_semantics<parallel>], iteration_bounds = array<i64: 1, 1>, scalar_prefetch = 0 : i64, scratch_operands = 0 : i64, tpu.core_type = #tpu.core_type<tc>, window_params = [{transform_indices = @transform_0, window_bounds = array<i64: 2, 384>}, {transform_indices = @transform_1, window_bounds = array<i64: 384, 1024>}, {transform_indices = @transform_2, window_bounds = array<i64: 1, 1024>}, {transform_indices = @transform_3, window_bounds = array<i64: 2, 1024>}]} {
    %c0 = arith.constant 0 : index
    %c0_0 = arith.constant 0 : index
    %0 = vector.load %arg2[%c0, %c0_0] : memref<2x384xf32, #tpu.memory_space<vmem>>, vector<2x384xf32>
    %1 = arith.truncf %0 : vector<2x384xf32> to vector<2x384xbf16>
    %c0_1 = arith.constant 0 : index
    %c0_2 = arith.constant 0 : index
    %2 = vector.load %arg3[%c0_1, %c0_2] : memref<384x1024xbf16, #tpu.memory_space<vmem>>, vector<384x1024xbf16>
    %cst = arith.constant dense<0.000000e+00> : vector<2x1024xf32>
    %3 = tpu.matmul %1, %2, %cst {dimension_numbers = #tpu.dot_dimension_numbers<[1], [0], [0], [1], [0, 0, 1, 1], [], []>} : vector<2x384xbf16>, vector<384x1024xbf16>, vector<2x1024xf32> -> vector<2x1024xf32>
    %c0_3 = arith.constant 0 : index
    %c0_4 = arith.constant 0 : index
    %4 = vector.load %arg4[%c0_3, %c0_4] : memref<1x1024xf32, #tpu.memory_space<vmem>>, vector<1x1024xf32>
    %5 = vector.broadcast %4 : vector<1x1024xf32> to vector<2x1024xf32>
    %6 = arith.addf %3, %5 : vector<2x1024xf32>
    %c0_5 = arith.constant 0 : index
    %c0_6 = arith.constant 0 : index
    %7 = vector.load %arg5[%c0_5, %c0_6] : memref<2x1024xf32, #tpu.memory_space<vmem>>, vector<2x1024xf32>
    tpu.vector_store %arg5[%c0_5, %c0_6], %6 {strides = array<i32>} : memref<2x1024xf32, #tpu.memory_space<vmem>>, vector<2x1024xf32>,
    return
  }
  func.func @transform_0(%arg0: i32, %arg1: i32) -> (i32, i32) {
    %c0_i32 = arith.constant 0 : i32
    %c0_i32_0 = arith.constant 0 : i32
    return %arg1, %c0_i32 : i32, i32
  }
  func.func @transform_1(%arg0: i32, %arg1: i32) -> (i32, i32) {
    %c0_i32 = arith.constant 0 : i32
    %c0_i32_0 = arith.constant 0 : i32
    return %c0_i32, %arg0 : i32, i32
  }
  func.func @transform_2(%arg0: i32, %arg1: i32) -> (i32, i32) {
    %c0_i32 = arith.constant 0 : i32
    %c0_i32_0 = arith.constant 0 : i32
    return %c0_i32, %arg0 : i32, i32
  }
  func.func @transform_3(%arg0: i32, %arg1: i32) -> (i32, i32) {
    %c0_i32 = arith.constant 0 : i32
    return %arg1, %arg0 : i32, i32
  }
}

</mosaic_0001>

<bundles_post_ra>
// kernel: tpu_custom_call.1
= control target key start
LH: loop header
LB: loop body
LE: loop exit
PB: predicated region body
PF: predicated region fallthrough
CT: control target
= control target key end

     0   :  { %8 = vsyncpa [#allocation3], 0  ;;  %s2755_s0 = inlined_call_operand.hbm [shape: f32[2,384], index: 0, kind: input, shape index: {}]   ;;  %s2756_s1 = inlined_call_operand.hbm [shape: bf16[384,1024], index: 1, kind: input, shape index: {}]   ;;  %s2757_s2 = inlined_call_operand.hbm [shape: f32[1,1024], index: 2, kind: input, shape index: {}]   ;;  %s2758_s3 = inlined_call_operand.hbm [shape: f32[2,1024], index: 3, kind: output, shape index: {}]  }
   0x1   :  { %9 = vsyncpa [#allocation6], 0  ;;  %s26_s14 = sshll.u32 %s2756_s1, 4  ;;  %s27_s14 = int_to_ptr.hbm [resolvable:$true] %s26_s14 }
   0x2   :  { %10 = vsyncpa [#allocation4], 0  ;;  %s2665_s15 = smov [#allocation5]   ;;  %s16_s19 = sshll.u32 %s2755_s0, 4  ;;  %s17_s19 = int_to_ptr.hbm [resolvable:$true] %s16_s19 }
   0x3   :  { %s28_s16 = sshll.u32 %s2665_s15, 4  ;;  %s2666_s20 = smov 512   ;;  %s29_s16 = int_to_ptr.vmem [resolvable:$true] %s28_s16 }
   0x4   :  { %s2667_s21 = smov 32   ;;  %s2668_s22 = smov [#allocation2]  }
   0x5   :  { %34 = dma.hbm_to_vmem [thread:$0]  %s27_s14, 24576, %s29_s16, [#allocation6], %s2666_s20, %s2666_s20, %s2667_s21  }
   0x6   :  { %s18_s23 = sshll.u32 %s2668_s22, 4  ;;  %s40_s26 = sshll.u32 %s2757_s2, 4  ;;  %s19_s23 = int_to_ptr.vmem [resolvable:$true] %s18_s23  ;;  %s41_s26 = int_to_ptr.hbm [resolvable:$true] %s40_s26 }
   0x7   :  { %21 = dma.hbm_to_vmem [thread:$0]  %s17_s19, 96, %s19_s23, [#allocation3]  }
   0x8   :  { %s2669_s1 = smov [#allocation7]  }
   0x9   :  { %s42_s27 = sshll.u32 %s2669_s1, 4  ;;  %s43_s27 = int_to_ptr.vmem [resolvable:$true] %s42_s27 }
   0xa   :  { %45 = dma.hbm_to_vmem [thread:$0]  %s41_s26, 128, %s43_s27, [#allocation6]  }
   0xb   :  { %2659 = dma.done.wait [#allocation3], 96  }
   0xc   :  { %2660 = vsyncadd [#allocation3], 4294967200 }
   0xd   :  { %2661 = dma.done.wait [#allocation6], 24704  }
   0xe   :  { %2662 = vsyncadd [#allocation6], 4294942592  ;;  %v1823_v0 = vld [vmem:[#allocation5 + $0x1c0] sm:$0xf]  ;;  %v2421_v9 = vld [vmem:[#allocation5 + $0x1c4] sm:$0xf] }
   0xf   :  { %v2425_v1 = vld [vmem:[#allocation5 + $0x1dc] sm:$0xf0]  ;;  %v1825_v10 = vld [vmem:[#allocation5 + $0x1e0] sm:$0xf0]  ;;  %vm1566_vm0 = vcmask 1041408   ;;  %vm1568_vm1 = vcmask 1045508  }
  0x10   :  { %v2079_v2 = vld [vmem:[#allocation5 + $0x3c0] sm:$0xf]  ;;  %v1824_v3 = vor.u32 %v2425_v1, %v1823_v0  ;;  %v1828_v12 = vor.u32 %v2421_v9, %v1825_v10  ;;  %v2413_v20 = vld [vmem:[#allocation5 + $0x184] sm:$0xf]  ;;  %vm1570_vm2 = vcmask 1043456   ;;  %s2670_s0 = smov [#allocation8]  }
  0x11   :  { %v2489_v4 = vld [vmem:[#allocation5 + $0x3dc] sm:$0xf0]  ;;  %v1793_v22 = vld [vmem:[#allocation5 + $0x1a0] sm:$0xf0]  ;;  %s1584_s2 = sshll.u32 %s2670_s0, 4  ;;  %s1586_s30 = sshll.u32 %s2758_s3, 4  ;;  %s1585_s2 = int_to_ptr.vmem [resolvable:$true] %s1584_s2  ;;  %s1587_s30 = int_to_ptr.hbm [resolvable:$true] %s1586_s30 }
  0x12   :  { %v2335_v5 = vld [vmem:[#allocation5 + $0x5c0] sm:$0xf]  ;;  %v2080_v7 = vor.u32 %v2489_v4, %v2079_v2  ;;  %1240 = vmatpush.bf16.msra.mxu0 %v1824_v3  ;;  %1279 = vmatpush.bf16.msra.mxu3 %v1828_v12  ;;  %v1796_v25 = vor.u32 %v2413_v20, %v1793_v22  ;;  %v2405_v31 = vld [vmem:[#allocation5 + $0x144] sm:$0xf] }
  0x13   :  { %v2553_v6 = vld [vmem:[#allocation5 + $0x5dc] sm:$0xf0]  ;;  %v1761_v32 = vld [vmem:[#allocation5 + $0x160] sm:$0xf0] }
  0x14   :  { %v2336_v8 = vor.u32 %v2553_v6, %v2335_v5  ;;  %v1791_v11 = vld [vmem:[#allocation5 + $0x180] sm:$0xf]  ;;  %1253 = vmatpush.bf16.msra.mxu1 %v2080_v7  ;;  %v1764_v38 = vor.u32 %v2405_v31, %v1761_v32  ;;  %v2397_v42 = vld [vmem:[#allocation5 + $0x104] sm:$0xf] }
  0x15   :  { %v2417_v13 = vld [vmem:[#allocation5 + $0x19c] sm:$0xf0]  ;;  %v1729_v43 = vld [vmem:[#allocation5 + $0x120] sm:$0xf0] }
  0x16   :  { %v2047_v14 = vld [vmem:[#allocation5 + $0x380] sm:$0xf]  ;;  %1266 = vmatpush.bf16.msra.mxu2 %v2336_v8  ;;  %v1792_v16 = vor.u32 %v2417_v13, %v1791_v11  ;;  %1280 = vmatpush.bf16.msra.mxu3 %v1796_v25  ;;  %v1732_v50 = vor.u32 %v2397_v42, %v1729_v43  ;;  %v2389_v54 = vld [vmem:[#allocation5 + $0xc4] sm:$0xf] }
  0x17   :  { %v2481_v15 = vld [vmem:[#allocation5 + $0x39c] sm:$0xf0]  ;;  %v1697_v55 = vld [vmem:[#allocation5 + $0xe0] sm:$0xf0] }
  0x18   :  { %v2048_v17 = vor.u32 %v2481_v15, %v2047_v14  ;;  %v2303_v18 = vld [vmem:[#allocation5 + $0x580] sm:$0xf]  ;;  %1241 = vmatpush.bf16.msra.mxu0 %v1792_v16  ;;  %v1700_v62 = vor.u32 %v2389_v54, %v1697_v55  ;;  %v2381_v2 = vld [vmem:[#allocation5 + $0x84] sm:$0xf] }
  0x19   :  { %v2545_v19 = vld [vmem:[#allocation5 + $0x59c] sm:$0xf0]  ;;  %v1665_v3 = vld [vmem:[#allocation5 + $0xa0] sm:$0xf0] }
  0x1a   :  { %v2304_v21 = vor.u32 %v2545_v19, %v2303_v18  ;;  %v1759_v23 = vld [vmem:[#allocation5 + $0x140] sm:$0xf]  ;;  %1254 = vmatpush.bf16.msra.mxu1 %v2048_v17  ;;  %1281 = vmatpush.bf16.msra.mxu3 %v1764_v38  ;;  %v1668_v10 = vor.u32 %v2381_v2, %v1665_v3  ;;  %v2373_v14 = vld [vmem:[#allocation5 + $0x44] sm:$0xf]  ;;  %v2490_v38 = vld [vmem:[#allocation5 + $0x3e4] sm:$0xf0] }
  0x1b   :  { %v2409_v24 = vld [vmem:[#allocation5 + $0x15c] sm:$0xf0]  ;;  %v1633_v15 = vld [vmem:[#allocation5 + $0x60] sm:$0xf0] }
  0x1c   :  { %v2015_v26 = vld [vmem:[#allocation5 + $0x340] sm:$0xf]  ;;  %v1760_v29 = vor.u32 %v2409_v24, %v1759_v23  ;;  %1267 = vmatpush.bf16.msra.mxu2 %v2304_v21  ;;  %v1636_v24 = vor.u32 %v2373_v14, %v1633_v15  ;;  %v2337_v32 = vld [vmem:[#allocation5 + $0x5e0] sm:$0xf0] }
  0x1d   :  { %v2473_v27 = vld [vmem:[#allocation5 + $0x35c] sm:$0xf0]  ;;  %v2477_v43 = vld [vmem:[#allocation5 + $0x384] sm:$0xf] }
  0x1e   :  { %v2271_v28 = vld [vmem:[#allocation5 + $0x540] sm:$0xf]  ;;  %v2016_v33 = vor.u32 %v2473_v27, %v2015_v26  ;;  %1242 = vmatpush.bf16.msra.mxu0 %v1760_v29  ;;  %1282 = vmatpush.bf16.msra.mxu3 %v1732_v50  ;;  %v2365_v26 = vld [vmem:[#allocation5 + $0x4] sm:$0xf]  ;;  %v2055_v50 = vld [vmem:[#allocation5 + $0x388] sm:$0xf] }
  0x1f   :  { %v2537_v30 = vld [vmem:[#allocation5 + $0x55c] sm:$0xf0]  ;;  %v1601_v27 = vld [vmem:[#allocation5 + $0x20] sm:$0xf0] }
  0x20   :  { %v2272_v34 = vor.u32 %v2537_v30, %v2271_v28  ;;  %v1727_v35 = vld [vmem:[#allocation5 + $0x100] sm:$0xf]  ;;  %1255 = vmatpush.bf16.msra.mxu1 %v2016_v33  ;;  %v2485_v28 = vld [vmem:[#allocation5 + $0x3c4] sm:$0xf]  ;;  %v1831_v33 = vld [vmem:[#allocation5 + $0x1c8] sm:$0xf] }
  0x21   :  { %v2401_v36 = vld [vmem:[#allocation5 + $0x11c] sm:$0xf0]  ;;  %v2081_v29 = vld [vmem:[#allocation5 + $0x3e0] sm:$0xf0] }
  0x22   :  { %v1983_v37 = vld [vmem:[#allocation5 + $0x300] sm:$0xf]  ;;  %v1728_v44 = vor.u32 %v2401_v36, %v1727_v35  ;;  %1268 = vmatpush.bf16.msra.mxu2 %v2272_v34  ;;  %1283 = vmatpush.bf16.msra.mxu3 %v1700_v62  ;;  %v2549_v30 = vld [vmem:[#allocation5 + $0x5c4] sm:$0xf]  ;;  %v2426_v34 = vld [vmem:[#allocation5 + $0x1e4] sm:$0xf0] }
  0x23   :  { %v2465_v39 = vld [vmem:[#allocation5 + $0x31c] sm:$0xf0]  ;;  %v1832_v42 = vor.u32 %v2426_v34, %v1831_v33  ;;  %v2410_v62 = vld [vmem:[#allocation5 + $0x164] sm:$0xf0]  ;;  %v2461_v2 = vld [vmem:[#allocation5 + $0x304] sm:$0xf] }
  0x24   :  { %v2239_v40 = vld [vmem:[#allocation5 + $0x500] sm:$0xf]  ;;  %v1984_v45 = vor.u32 %v2465_v39, %v1983_v37  ;;  %1243 = vmatpush.bf16.msra.mxu0 %v1728_v44  ;;  %v2087_v37 = vld [vmem:[#allocation5 + $0x3c8] sm:$0xf]  ;;  %v1604_v39 = vor.u32 %v2365_v26, %v1601_v27  ;;  %v2049_v44 = vld [vmem:[#allocation5 + $0x3a0] sm:$0xf0] }
  0x25   :  { %v2529_v41 = vld [vmem:[#allocation5 + $0x51c] sm:$0xf0]  ;;  %v1985_v3 = vld [vmem:[#allocation5 + $0x320] sm:$0xf0]  ;;  %v1703_v27 = vld [vmem:[#allocation5 + $0xc8] sm:$0xf] }
  0x26   :  { %v2240_v46 = vor.u32 %v2529_v41, %v2239_v40  ;;  %v1695_v47 = vld [vmem:[#allocation5 + $0xc0] sm:$0xf]  ;;  %1256 = vmatpush.bf16.msra.mxu1 %v1984_v45  ;;  %1284 = vmatpush.bf16.msra.mxu3 %v1668_v10  ;;  %v2084_v40 = vor.u32 %v2485_v28, %v2081_v29  ;;  %v2340_v41 = vor.u32 %v2549_v30, %v2337_v32  ;;  %v2541_v45 = vld [vmem:[#allocation5 + $0x584] sm:$0xf]  ;;  %v2402_v10 = vld [vmem:[#allocation5 + $0x124] sm:$0xf0] }
  0x27   :  { %v2393_v48 = vld [vmem:[#allocation5 + $0xdc] sm:$0xf0]  ;;  %v1988_v15 = vor.u32 %v2461_v2, %v1985_v3  ;;  %v2209_v26 = vld [vmem:[#allocation5 + $0x4e0] sm:$0xf0]  ;;  %v2394_v28 = vld [vmem:[#allocation5 + $0xe4] sm:$0xf0] }
  0x28   :  { %v1951_v49 = vld [vmem:[#allocation5 + $0x2c0] sm:$0xf]  ;;  %v1696_v56 = vor.u32 %v2393_v48, %v1695_v47  ;;  %1269 = vmatpush.bf16.msra.mxu2 %v2240_v46  ;;  %v2088_v46 = vor.u32 %v2490_v38, %v2087_v37  ;;  %v2305_v47 = vld [vmem:[#allocation5 + $0x5a0] sm:$0xf0]  ;;  %v1799_v48 = vld [vmem:[#allocation5 + $0x188] sm:$0xf]  ;;  %v1704_v33 = vor.u32 %v2394_v28, %v1703_v27 }
  0x29   :  { %v2457_v51 = vld [vmem:[#allocation5 + $0x2dc] sm:$0xf0]  ;;  %v2308_v54 = vor.u32 %v2541_v45, %v2305_v47  ;;  %v1959_v29 = vld [vmem:[#allocation5 + $0x2c8] sm:$0xf]  ;;  %v2445_v34 = vld [vmem:[#allocation5 + $0x284] sm:$0xf] }
  0x2a   :  { %v2207_v52 = vld [vmem:[#allocation5 + $0x4c0] sm:$0xf]  ;;  %v1952_v57 = vor.u32 %v2457_v51, %v1951_v49  ;;  %1244 = vmatpush.bf16.msra.mxu0 %v1696_v56  ;;  %1285 = vmatpush.bf16.msra.mxu3 %v1636_v24  ;;  %v2418_v49 = vld [vmem:[#allocation5 + $0x1a4] sm:$0xf0]  ;;  %v2469_v56 = vld [vmem:[#allocation5 + $0x344] sm:$0xf] }
  0x2b   :  { %v2521_v53 = vld [vmem:[#allocation5 + $0x4dc] sm:$0xf0]  ;;  %v2482_v51 = vld [vmem:[#allocation5 + $0x3a4] sm:$0xf0]  ;;  %v1800_v55 = vor.u32 %v2418_v49, %v1799_v48  ;;  %v2177_v38 = vld [vmem:[#allocation5 + $0x4a0] sm:$0xf0] }
  0x2c   :  { %v2208_v58 = vor.u32 %v2521_v53, %v2207_v52  ;;  %v1663_v59 = vld [vmem:[#allocation5 + $0x80] sm:$0xf]  ;;  %1257 = vmatpush.bf16.msra.mxu1 %v1952_v57  ;;  %v58_v52 = vld [vmem:[#allocation2] sm:$0x3f]  ;;  %v2052_v53 = vor.u32 %v2477_v43, %v2049_v44  ;;  %v2017_v57 = vld [vmem:[#allocation5 + $0x360] sm:$0xf0] }
  0x2d   :  { %v2385_v60 = vld [vmem:[#allocation5 + $0x9c] sm:$0xf0]  ;;  %60 = vst [vmem:[#allocation1] ss:$4 sm:$0xff] %v58_v52  ;;  %v2458_v30 = vld [vmem:[#allocation5 + $0x2e4] sm:$0xf0] }
  0x2e   :  { %v1919_v61 = vld [vmem:[#allocation5 + $0x280] sm:$0xf]  ;;  %v1664_v4 = vor.u32 %v2385_v60, %v1663_v59  ;;  %1270 = vmatpush.bf16.msra.mxu2 %v2208_v58  ;;  %1286 = vmatpush.bf16.msra.mxu3 %v1604_v39  ;;  %v2533_v58 = vld [vmem:[#allocation5 + $0x544] sm:$0xf]  ;;  %v2056_v59 = vor.u32 %v2482_v51, %v2055_v50  ;;  %v1960_v37 = vor.u32 %v2458_v30, %v1959_v29  ;;  %v1671_v39 = vld [vmem:[#allocation5 + $0x88] sm:$0xf] }
  0x2f   :  { %v2449_v63 = vld [vmem:[#allocation5 + $0x29c] sm:$0xf0]  ;;  %v2273_v60 = vld [vmem:[#allocation5 + $0x560] sm:$0xf0]  ;;  %v1639_v51 = vld [vmem:[#allocation5 + $0x48] sm:$0xf] }
  0x30   :  { %v2175_v0 = vld [vmem:[#allocation5 + $0x480] sm:$0xf]  ;;  %v1920_v5 = vor.u32 %v2449_v63, %v1919_v61  ;;  %1245 = vmatpush.bf16.msra.mxu0 %v1664_v4  ;;  %v1767_v61 = vld [vmem:[#allocation5 + $0x148] sm:$0xf]  ;;  %v2276_v4 = vor.u32 %v2533_v58, %v2273_v60  ;;  %v1889_v47 = vld [vmem:[#allocation5 + $0x260] sm:$0xf0] }
  0x31   :  { %v2513_v1 = vld [vmem:[#allocation5 + $0x49c] sm:$0xf0]  ;;  %v2023_v63 = vld [vmem:[#allocation5 + $0x348] sm:$0xf]  ;;  %v2501_v48 = vld [vmem:[#allocation5 + $0x444] sm:$0xf] }
  0x32   :  { %v2176_v6 = vor.u32 %v2513_v1, %v2175_v0  ;;  %v1631_v7 = vld [vmem:[#allocation5 + $0x40] sm:$0xf]  ;;  %1258 = vmatpush.bf16.msra.mxu1 %v1920_v5  ;;  %1331 = vmatpush.bf16.msrb.mxu3 %v2088_v46  ;;  %v2474_v0 = vld [vmem:[#allocation5 + $0x364] sm:$0xf0]  ;;  %v2020_v1 = vor.u32 %v2469_v56, %v2017_v57  ;;  %v1768_v5 = vor.u32 %v2410_v62, %v1767_v61  ;;  %v2437_v46 = vld [vmem:[#allocation5 + $0x244] sm:$0xf] }
  0x33   :  { %v2377_v8 = vld [vmem:[#allocation5 + $0x5c] sm:$0xf0]  ;;  %v2145_v50 = vld [vmem:[#allocation5 + $0x460] sm:$0xf0]  ;;  %v2378_v52 = vld [vmem:[#allocation5 + $0x64] sm:$0xf0] }
  0x34   :  { %v1887_v9 = vld [vmem:[#allocation5 + $0x240] sm:$0xf]  ;;  %v1632_v16 = vor.u32 %v2377_v8, %v1631_v7  ;;  %1271 = vmatpush.bf16.msra.mxu2 %v2176_v6  ;;  %v2525_v6 = vld [vmem:[#allocation5 + $0x504] sm:$0xf]  ;;  %v1735_v8 = vld [vmem:[#allocation5 + $0x108] sm:$0xf]  ;;  %v2148_v58 = vor.u32 %v2501_v48, %v2145_v50 }
  0x35   :  { %v2441_v11 = vld [vmem:[#allocation5 + $0x25c] sm:$0xf0]  ;;  %v2241_v7 = vld [vmem:[#allocation5 + $0x520] sm:$0xf0]  ;;  %v1607_v62 = vld [vmem:[#allocation5 + $0x8] sm:$0xf] }
  0x36   :  { %v2143_v12 = vld [vmem:[#allocation5 + $0x440] sm:$0xf]  ;;  %v1888_v19 = vor.u32 %v2441_v11, %v1887_v9  ;;  %1246 = vmatpush.bf16.msra.mxu0 %v1632_v16  ;;  %1332 = vmatpush.bf16.msrb.mxu3 %v2056_v59  ;;  %v2024_v9 = vor.u32 %v2474_v0, %v2023_v63  ;;  %v1991_v11 = vld [vmem:[#allocation5 + $0x308] sm:$0xf]  ;;  %v2429_v56 = vld [vmem:[#allocation5 + $0x204] sm:$0xf]  ;;  %v1640_v59 = vor.u32 %v2378_v52, %v1639_v51 }
  0x37   :  { %v2505_v13 = vld [vmem:[#allocation5 + $0x45c] sm:$0xf0]  ;;  %v1857_v57 = vld [vmem:[#allocation5 + $0x220] sm:$0xf0]  ;;  %v2370_v0 = vld [vmem:[#allocation5 + $0x24] sm:$0xf0] }
  0x38   :  { %v1599_v17 = vld [vmem:[#allocation5] sm:$0xf]  ;;  %v2144_v20 = vor.u32 %v2505_v13, %v2143_v12  ;;  %1259 = vmatpush.bf16.msra.mxu1 %v1888_v19  ;;  %v2466_v12 = vld [vmem:[#allocation5 + $0x324] sm:$0xf0]  ;;  %v2244_v19 = vor.u32 %v2525_v6, %v2241_v7  ;;  %v2493_v60 = vld [vmem:[#allocation5 + $0x404] sm:$0xf]  ;;  %v1860_v6 = vor.u32 %v2429_v56, %v1857_v57 }
  0x39   :  { %v2369_v18 = vld [vmem:[#allocation5 + $0x1c] sm:$0xf0]  ;;  %v61_v13 = vld.sshfl [vmem:[#allocation1] sm:$0xff pattern:$0x73625140] }
  0x3a   :  { %v1855_v21 = vld [vmem:[#allocation5 + $0x200] sm:$0xf]  ;;  %v1600_v31 = vor.u32 %v2369_v18, %v1599_v17  ;;  %1272 = vmatpush.bf16.msra.mxu2 %v2144_v20  ;;  %v2700_v16 = vpack.c.bf16 %v61_v13, %v61_v13  ;;  %v1736_v20 = vor.u32 %v2402_v10, %v1735_v8  ;;  %1333 = vmatpush.bf16.msrb.mxu3 %v2024_v9  ;;  %v2113_v61 = vld [vmem:[#allocation5 + $0x420] sm:$0xf0]  ;;  %v2434_v2 = vld [vmem:[#allocation5 + $0x224] sm:$0xf0] }
  0x3b   :  { %v2433_v22 = vld [vmem:[#allocation5 + $0x21c] sm:$0xf0]  ;;  %v2343_v3 = vld [vmem:[#allocation5 + $0x5c8] sm:$0xf]  ;;  %v1833_v7 = vld [vmem:[#allocation5 + $0x1e8] sm:$0xf0]  ;;  %v2116_v10 = vor.u32 %v2493_v60, %v2113_v61 }
  0x3c   :  { %v2111_v23 = vld [vmem:[#allocation5 + $0x400] sm:$0xf]  ;;  %v1856_v35 = vor.u32 %v2433_v22, %v1855_v21  ;;  %1247 = vmatpush.bf16.msra.mxu0 %v1600_v31  ;;  %v2453_v21 = vld [vmem:[#allocation5 + $0x2c4] sm:$0xf]  ;;  %1287 = vmatmul.bf16.vlgmr.msra.gmra.mxu3 %v2700_v16  ;;  %v2486_v8 = vld [vmem:[#allocation5 + $0x3cc] sm:$0xf] }
  0x3d   :  { %v2497_v25 = vld [vmem:[#allocation5 + $0x41c] sm:$0xf0]  ;;  %v1953_v22 = vld [vmem:[#allocation5 + $0x2e0] sm:$0xf0]  ;;  %v2089_v9 = vld [vmem:[#allocation5 + $0x3e8] sm:$0xf0] }
  0x3e   :  { %v2112_v36 = vor.u32 %v2497_v25, %v2111_v23  ;;  %1260 = vmatpush.bf16.msra.mxu1 %v1856_v35  ;;  %v62_v14 = vld.sshfl [vmem:[#allocation1 + $0x8] sm:$0xff pattern:$0x73625140]  ;;  %v63_v18 = vld.sshfl [vmem:[#allocation1 + $0x10] sm:$0xff pattern:$0x73625140]  ;;  %v1992_v25 = vor.u32 %v2466_v12, %v1991_v11  ;;  %v1956_v31 = vor.u32 %v2453_v21, %v1953_v22  ;;  %v1608_v11 = vor.u32 %v2370_v0, %v1607_v62 }
  0x3f   :  { %v2702_v17 = vpack.c.bf16 %v62_v14, %v62_v14  ;;  %v2517_v23 = vld [vmem:[#allocation5 + $0x4c4] sm:$0xf]  ;;  %v2704_v24 = vpack.c.bf16 %v63_v18, %v63_v18  ;;  %1248 = vmatmul.bf16.vlgmr.msra.gmra.mxu0 %v2700_v16  ;;  %v2550_v12 = vld [vmem:[#allocation5 + $0x5cc] sm:$0xf]  ;;  %v2546_v21 = vld [vmem:[#allocation5 + $0x5a4] sm:$0xf0] }
  0x40   :  { %1273 = vmatpush.bf16.msra.mxu2 %v2112_v36  ;;  %1292 = vmatpush.bf16.msrb.mxu0 %v2084_v40  ;;  %v2212_v32 = vor.u32 %v2517_v23, %v2209_v26  ;;  %v1921_v35 = vld [vmem:[#allocation5 + $0x2a0] sm:$0xf0]  ;;  %v2386_v40 = vld [vmem:[#allocation5 + $0xa4] sm:$0xf0]  ;;  %v2345_v13 = vld [vmem:[#allocation5 + $0x5e8] sm:$0xf0] }
  0x41   :  { %1261 = vmatmul.bf16.vlgmr.msra.gmra.mxu1 %v2702_v17  ;;  %v2509_v36 = vld [vmem:[#allocation5 + $0x484] sm:$0xf]  ;;  %1334 = vmatpush.bf16.msrb.mxu3 %v1992_v25  ;;  %v1924_v43 = vor.u32 %v2445_v34, %v1921_v35  ;;  %v1672_v45 = vor.u32 %v2386_v40, %v1671_v39  ;;  %v2414_v22 = vld [vmem:[#allocation5 + $0x18c] sm:$0xf]  ;;  %v2348_v23 = vor.u32 %v2550_v12, %v2345_v13  ;;  %v2538_v34 = vld [vmem:[#allocation5 + $0x564] sm:$0xf0] }
  0x42   :  { %1305 = vmatpush.bf16.msrb.mxu1 %v2340_v41  ;;  %v1927_v41 = vld [vmem:[#allocation5 + $0x288] sm:$0xf]  ;;  %v2180_v44 = vor.u32 %v2509_v36, %v2177_v38  ;;  %v1801_v25 = vld [vmem:[#allocation5 + $0x1a8] sm:$0xf0] }
  0x43   :  { %1274 = vmatmul.bf16.vlgmr.msra.gmra.mxu2 %v2704_v24  ;;  %v2478_v26 = vld [vmem:[#allocation5 + $0x38c] sm:$0xf]  ;;  %v2215_v57 = vld [vmem:[#allocation5 + $0x4c8] sm:$0xf] }
  0x44   :  { %1318 = vmatpush.bf16.msrb.mxu2 %v1832_v42  ;;  %1293 = vmatpush.bf16.msrb.mxu0 %v2052_v53  ;;  %v2450_v42 = vld [vmem:[#allocation5 + $0x2a4] sm:$0xf0]  ;;  %v2057_v27 = vld [vmem:[#allocation5 + $0x3a8] sm:$0xf0] }
  0x45   :  { %1335 = vmatpush.bf16.msrb.mxu3 %v1960_v37  ;;  %v1928_v49 = vor.u32 %v2450_v42, %v1927_v41  ;;  %v1895_v53 = vld [vmem:[#allocation5 + $0x248] sm:$0xf]  ;;  %v2542_v28 = vld [vmem:[#allocation5 + $0x58c] sm:$0xf] }
  0x46   :  { %1306 = vmatpush.bf16.msrb.mxu1 %v2308_v54  ;;  %v2442_v54 = vld [vmem:[#allocation5 + $0x264] sm:$0xf0]  ;;  %v2313_v29 = vld [vmem:[#allocation5 + $0x5a8] sm:$0xf0] }
  0x47   :  { %v1896_v63 = vor.u32 %v2442_v54, %v1895_v53  ;;  %v2406_v35 = vld [vmem:[#allocation5 + $0x14c] sm:$0xf]  ;;  %v2316_v36 = vor.u32 %v2542_v28, %v2313_v29 }
  0x48   :  { %1319 = vmatpush.bf16.msrb.mxu2 %v1800_v55  ;;  %1294 = vmatpush.bf16.msrb.mxu0 %v2020_v1  ;;  %v1892_v55 = vor.u32 %v2437_v46, %v1889_v47  ;;  %v1863_v1 = vld [vmem:[#allocation5 + $0x208] sm:$0xf]  ;;  %v1769_v37 = vld [vmem:[#allocation5 + $0x168] sm:$0xf0] }
  0x49   :  { %1336 = vmatpush.bf16.msrb.mxu3 %v1928_v49  ;;  %v1864_v14 = vor.u32 %v2434_v2, %v1863_v1  ;;  %v2470_v38 = vld [vmem:[#allocation5 + $0x34c] sm:$0xf]  ;;  %v2530_v46 = vld [vmem:[#allocation5 + $0x524] sm:$0xf0] }
  0x4a   :  { %1307 = vmatpush.bf16.msrb.mxu1 %v2276_v4  ;;  %v2554_v4 = vld [vmem:[#allocation5 + $0x5e4] sm:$0xf0]  ;;  %v2025_v39 = vld [vmem:[#allocation5 + $0x368] sm:$0xf0] }
  0x4b   :  { %v2534_v40 = vld [vmem:[#allocation5 + $0x54c] sm:$0xf] }
  0x4c   :  { %1320 = vmatpush.bf16.msrb.mxu2 %v1768_v5  ;;  %1295 = vmatpush.bf16.msrb.mxu0 %v1988_v15  ;;  %v2422_v5 = vld [vmem:[#allocation5 + $0x1cc] sm:$0xf]  ;;  %v2344_v15 = vor.u32 %v2554_v4, %v2343_v3 }
  0x4d   :  { %1337 = vmatpush.bf16.msrb.mxu3 %v1896_v63  ;;  %v1836_v18 = vor.u32 %v2422_v5, %v1833_v7  ;;  %v2281_v41 = vld [vmem:[#allocation5 + $0x568] sm:$0xf0]  ;;  %v2183_v5 = vld [vmem:[#allocation5 + $0x488] sm:$0xf] }
  0x4e   :  { %1308 = vmatpush.bf16.msrb.mxu1 %v2244_v19  ;;  %v2092_v19 = vor.u32 %v2486_v8, %v2089_v9  ;;  %v2398_v47 = vld [vmem:[#allocation5 + $0x10c] sm:$0xf]  ;;  %v2284_v48 = vor.u32 %v2534_v40, %v2281_v41  ;;  %v1839_v41 = vld [vmem:[#allocation5 + $0x1d0] sm:$0xf] }
  0x4f   :  { %v1737_v49 = vld [vmem:[#allocation5 + $0x128] sm:$0xf0] }
  0x50   :  { %1321 = vmatpush.bf16.msrb.mxu2 %v1736_v20  ;;  %1296 = vmatpush.bf16.msrb.mxu0 %v1956_v31  ;;  %v2311_v20 = vld [vmem:[#allocation5 + $0x588] sm:$0xf]  ;;  %v1804_v31 = vor.u32 %v2414_v22, %v1801_v25  ;;  %v2462_v50 = vld [vmem:[#allocation5 + $0x30c] sm:$0xf] }
  0x51   :  { %1338 = vmatpush.bf16.msrb.mxu3 %v1864_v14  ;;  %v2312_v30 = vor.u32 %v2546_v21, %v2311_v20  ;;  %v1993_v51 = vld [vmem:[#allocation5 + $0x328] sm:$0xf0]  ;;  %v2506_v20 = vld [vmem:[#allocation5 + $0x464] sm:$0xf0] }
  0x52   :  { %1309 = vmatpush.bf16.msrb.mxu1 %v2212_v32  ;;  %v2060_v32 = vor.u32 %v2478_v26, %v2057_v27  ;;  %v2526_v52 = vld [vmem:[#allocation5 + $0x50c] sm:$0xf]  ;;  %v1996_v56 = vor.u32 %v2462_v50, %v1993_v51  ;;  %v2423_v50 = vld [vmem:[#allocation5 + $0x1d4] sm:$0xf] }
  0x53   :  { %v2249_v53 = vld [vmem:[#allocation5 + $0x528] sm:$0xf0]  ;;  %v1841_v51 = vld [vmem:[#allocation5 + $0x1f0] sm:$0xf0] }
  0x54   :  { %1322 = vmatpush.bf16.msrb.mxu2 %v1704_v33  ;;  %1297 = vmatpush.bf16.msrb.mxu0 %v1924_v43  ;;  %v2279_v33 = vld [vmem:[#allocation5 + $0x548] sm:$0xf]  ;;  %v1772_v43 = vor.u32 %v2406_v35, %v1769_v37  ;;  %v2252_v60 = vor.u32 %v2526_v52, %v2249_v53  ;;  %v1705_v61 = vld [vmem:[#allocation5 + $0xe8] sm:$0xf0] }
  0x55   :  { %1383 = vmatpush.bf16.msra.mxu3 %v2348_v23  ;;  %v2280_v42 = vor.u32 %v2538_v34, %v2279_v33  ;;  %v2454_v62 = vld [vmem:[#allocation5 + $0x2cc] sm:$0xf] }
  0x56   :  { %1310 = vmatpush.bf16.msrb.mxu1 %v2180_v44  ;;  %1339 = vmatmul.bf16.vlgmr.msrb.gmra.mxu3 %v2702_v17  ;;  %v2028_v44 = vor.u32 %v2470_v38, %v2025_v39  ;;  %v1961_v63 = vld [vmem:[#allocation5 + $0x2e8] sm:$0xf0] }
  0x57   :  { %v2518_v0 = vld [vmem:[#allocation5 + $0x4cc] sm:$0xf]  ;;  %v1964_v4 = vor.u32 %v2454_v62, %v1961_v63  ;;  %v2547_v62 = vld [vmem:[#allocation5 + $0x5ac] sm:$0xf0]  ;;  %v2415_v63 = vld [vmem:[#allocation5 + $0x194] sm:$0xf] }
  0x58   :  { %1323 = vmatpush.bf16.msrb.mxu2 %v1672_v45  ;;  %1298 = vmatpush.bf16.msrb.mxu0 %v1892_v55  ;;  %v2247_v45 = vld [vmem:[#allocation5 + $0x508] sm:$0xf]  ;;  %v1740_v55 = vor.u32 %v2398_v47, %v1737_v49  ;;  %v2217_v1 = vld [vmem:[#allocation5 + $0x4e8] sm:$0xf0]  ;;  %v2555_v47 = vld [vmem:[#allocation5 + $0x5ec] sm:$0xf0] }
  0x59   :  { %1384 = vmatpush.bf16.msra.mxu3 %v2316_v36  ;;  %v2248_v54 = vor.u32 %v2530_v46, %v2247_v45  ;;  %v2382_v7 = vld [vmem:[#allocation5 + $0x8c] sm:$0xf]  ;;  %v2220_v8 = vor.u32 %v2518_v0, %v2217_v1  ;;  %v2491_v45 = vld [vmem:[#allocation5 + $0x3ec] sm:$0xf0]  ;;  %v1809_v0 = vld [vmem:[#allocation5 + $0x1b0] sm:$0xf0] }
  0x5a   :  { %1311 = vmatpush.bf16.msrb.mxu1 %v2148_v58  ;;  %v2522_v58 = vld [vmem:[#allocation5 + $0x4e4] sm:$0xf0]  ;;  %v1673_v9 = vld [vmem:[#allocation5 + $0xa8] sm:$0xf0]  ;;  %v2351_v46 = vld [vmem:[#allocation5 + $0x5d0] sm:$0xf] }
  0x5b   :  { %v2216_v2 = vor.u32 %v2522_v58, %v2215_v57  ;;  %v2510_v12 = vld [vmem:[#allocation5 + $0x48c] sm:$0xf]  ;;  %v2419_v57 = vld [vmem:[#allocation5 + $0x1ac] sm:$0xf0] }
  0x5c   :  { %1324 = vmatpush.bf16.msrb.mxu2 %v1640_v59  ;;  %1299 = vmatpush.bf16.msrb.mxu0 %v1860_v6  ;;  %v2390_v59 = vld [vmem:[#allocation5 + $0xcc] sm:$0xf]  ;;  %v2514_v6 = vld [vmem:[#allocation5 + $0x4a4] sm:$0xf0]  ;;  %v2063_v58 = vld [vmem:[#allocation5 + $0x390] sm:$0xf] }
  0x5d   :  { %1385 = vmatpush.bf16.msra.mxu3 %v2284_v48  ;;  %v1708_v3 = vor.u32 %v2390_v59, %v1705_v61  ;;  %v2185_v13 = vld [vmem:[#allocation5 + $0x4a8] sm:$0xf0]  ;;  %v2184_v14 = vor.u32 %v2514_v6, %v2183_v5  ;;  %v1844_v59 = vor.u32 %v2423_v50, %v1841_v51  ;;  %v2319_v61 = vld [vmem:[#allocation5 + $0x590] sm:$0xf]  ;;  %v2383_v50 = vld [vmem:[#allocation5 + $0x94] sm:$0xf] }
  0x5e   :  { %1312 = vmatpush.bf16.msrb.mxu1 %v2116_v10  ;;  %v2446_v10 = vld [vmem:[#allocation5 + $0x28c] sm:$0xf]  ;;  %v2188_v22 = vor.u32 %v2510_v12, %v2185_v13  ;;  %v2411_v5 = vld [vmem:[#allocation5 + $0x16c] sm:$0xf0]  ;;  %v1777_v12 = vld [vmem:[#allocation5 + $0x170] sm:$0xf0] }
  0x5f   :  { %1300 = vmatmul.bf16.vlgmr.msrb.gmra.mxu0 %v2702_v17  ;;  %v2374_v21 = vld [vmem:[#allocation5 + $0x4c] sm:$0xf]  ;;  %v2031_v6 = vld [vmem:[#allocation5 + $0x350] sm:$0xf]  ;;  %v1681_v51 = vld [vmem:[#allocation5 + $0xb0] sm:$0xf0] }
  0x60   :  { %1325 = vmatpush.bf16.msrb.mxu2 %v1608_v11  ;;  %1344 = vmatpush.bf16.msra.mxu0 %v2344_v15  ;;  %v1929_v11 = vld [vmem:[#allocation5 + $0x2a8] sm:$0xf0]  ;;  %v1676_v15 = vor.u32 %v2382_v7, %v1673_v9  ;;  %v1812_v7 = vor.u32 %v2415_v63, %v1809_v0  ;;  %v2287_v9 = vld [vmem:[#allocation5 + $0x550] sm:$0xf]  ;;  %v1649_v63 = vld [vmem:[#allocation5 + $0x70] sm:$0xf0] }
  0x61   :  { %1313 = vmatmul.bf16.vlgmr.msrb.gmra.mxu1 %v2704_v24  ;;  %1386 = vmatpush.bf16.msra.mxu3 %v2252_v60  ;;  %v1641_v23 = vld [vmem:[#allocation5 + $0x68] sm:$0xf0]  ;;  %v2483_v60 = vld [vmem:[#allocation5 + $0x3ac] sm:$0xf0] }
  0x62   :  { %1357 = vmatpush.bf16.msra.mxu1 %v1836_v18  ;;  %v1932_v18 = vor.u32 %v2446_v10, %v1929_v11  ;;  %v2438_v25 = vld [vmem:[#allocation5 + $0x24c] sm:$0xf]  ;;  %v2539_v10 = vld [vmem:[#allocation5 + $0x56c] sm:$0xf0]  ;;  %v2407_v11 = vld [vmem:[#allocation5 + $0x154] sm:$0xf] }
  0x63   :  { %1326 = vmatmul.bf16.vlgmr.msrb.gmra.mxu2 %v2700_v16  ;;  %v1897_v26 = vld [vmem:[#allocation5 + $0x268] sm:$0xf0] }
  0x64   :  { %1370 = vmatpush.bf16.msra.mxu2 %v2092_v19  ;;  %1345 = vmatpush.bf16.msra.mxu0 %v2312_v30  ;;  %v2151_v19 = vld [vmem:[#allocation5 + $0x448] sm:$0xf]  ;;  %v2502_v27 = vld [vmem:[#allocation5 + $0x44c] sm:$0xf]  ;;  %v1900_v33 = vor.u32 %v2438_v25, %v1897_v26  ;;  %v2531_v25 = vld [vmem:[#allocation5 + $0x52c] sm:$0xf0] }
  0x65   :  { %1387 = vmatpush.bf16.msra.mxu3 %v2220_v8  ;;  %v2153_v28 = vld [vmem:[#allocation5 + $0x468] sm:$0xf0]  ;;  %v2152_v29 = vor.u32 %v2506_v20, %v2151_v19  ;;  %v2119_v30 = vld [vmem:[#allocation5 + $0x408] sm:$0xf]  ;;  %v2475_v8 = vld [vmem:[#allocation5 + $0x36c] sm:$0xf0] }
  0x66   :  { %1358 = vmatpush.bf16.msra.mxu1 %v1804_v31  ;;  %v2498_v31 = vld [vmem:[#allocation5 + $0x424] sm:$0xf0]  ;;  %v2366_v34 = vld [vmem:[#allocation5 + $0xc] sm:$0xf]  ;;  %v2156_v37 = vor.u32 %v2502_v27, %v2153_v28  ;;  %v2403_v19 = vld [vmem:[#allocation5 + $0x12c] sm:$0xf0] }
  0x67   :  { %v1609_v35 = vld [vmem:[#allocation5 + $0x28] sm:$0xf0]  ;;  %v1999_v20 = vld [vmem:[#allocation5 + $0x310] sm:$0xf]  ;;  %v2399_v26 = vld [vmem:[#allocation5 + $0x114] sm:$0xf] }
  0x68   :  { %1371 = vmatpush.bf16.msra.mxu2 %v2060_v32  ;;  %1346 = vmatpush.bf16.msra.mxu0 %v2280_v42  ;;  %v1644_v32 = vor.u32 %v2374_v21, %v1641_v23  ;;  %v2430_v36 = vld [vmem:[#allocation5 + $0x20c] sm:$0xf]  ;;  %v2427_v42 = vld [vmem:[#allocation5 + $0x1ec] sm:$0xf0]  ;;  %v1612_v48 = vor.u32 %v2366_v34, %v1609_v35  ;;  %v1780_v21 = vor.u32 %v2407_v11, %v1777_v12  ;;  %v1745_v27 = vld [vmem:[#allocation5 + $0x130] sm:$0xf0] }
  0x69   :  { %1388 = vmatpush.bf16.msra.mxu3 %v2188_v22  ;;  %v1865_v38 = vld [vmem:[#allocation5 + $0x228] sm:$0xf0]  ;;  %v1840_v53 = vor.u32 %v2427_v42, %v1839_v41  ;;  %v2467_v22 = vld [vmem:[#allocation5 + $0x32c] sm:$0xf0]  ;;  %v1748_v34 = vor.u32 %v2399_v26, %v1745_v27  ;;  %v1617_v11 = vld [vmem:[#allocation5 + $0x30] sm:$0xf0] }
  0x6a   :  { %1359 = vmatpush.bf16.msra.mxu1 %v1772_v43  ;;  %v2494_v39 = vld [vmem:[#allocation5 + $0x40c] sm:$0xf]  ;;  %v2095_v43 = vld [vmem:[#allocation5 + $0x3d0] sm:$0xf]  ;;  %v1868_v49 = vor.u32 %v2430_v36, %v1865_v38  ;;  %v2391_v38 = vld [vmem:[#allocation5 + $0xd4] sm:$0xf] }
  0x6b   :  { %v2121_v40 = vld [vmem:[#allocation5 + $0x428] sm:$0xf0]  ;;  %v2255_v23 = vld [vmem:[#allocation5 + $0x510] sm:$0xf]  ;;  %v2487_v12 = vld [vmem:[#allocation5 + $0x3d4] sm:$0xf] }
  0x6c   :  { %1372 = vmatpush.bf16.msra.mxu2 %v2028_v44  ;;  %1347 = vmatpush.bf16.msra.mxu0 %v2248_v54  ;;  %v2120_v44 = vor.u32 %v2498_v31, %v2119_v30  ;;  %v2124_v52 = vor.u32 %v2494_v39, %v2121_v40  ;;  %v2096_v54 = vor.u32 %v2491_v45, %v2095_v43  ;;  %v1711_v31 = vld [vmem:[#allocation5 + $0xd0] sm:$0xf]  ;;  %v1713_v39 = vld [vmem:[#allocation5 + $0xf0] sm:$0xf0] }
  0x6d   :  { %1389 = vmatpush.bf16.msra.mxu3 %v2156_v37  ;;  %v2256_v30 = vor.u32 %v2531_v25, %v2255_v23  ;;  %v2459_v35 = vld [vmem:[#allocation5 + $0x2ec] sm:$0xf0]  ;;  %v2103_v23 = vld [vmem:[#allocation5 + $0x3d8] sm:$0xf] }
  0x6e   :  { %1360 = vmatpush.bf16.msra.mxu1 %v1740_v55  ;;  %v2352_v55 = vor.u32 %v2555_v47, %v2351_v46  ;;  %v2223_v36 = vld [vmem:[#allocation5 + $0x4d0] sm:$0xf]  ;;  %v1716_v46 = vor.u32 %v2391_v38, %v1713_v39  ;;  %v2492_v25 = vld [vmem:[#allocation5 + $0x3f4] sm:$0xf0] }
  0x6f   :  { %v2523_v37 = vld [vmem:[#allocation5 + $0x4ec] sm:$0xf0]  ;;  %v2484_v38 = vld [vmem:[#allocation5 + $0x3b4] sm:$0xf0] }
  0x70   :  { %1373 = vmatpush.bf16.msra.mxu2 %v1996_v56  ;;  %1348 = vmatpush.bf16.msra.mxu0 %v2216_v2  ;;  %v1807_v56 = vld [vmem:[#allocation5 + $0x190] sm:$0xf]  ;;  %v2064_v2 = vor.u32 %v2483_v60, %v2063_v58  ;;  %v2224_v42 = vor.u32 %v2523_v37, %v2223_v36  ;;  %v1684_v58 = vor.u32 %v2383_v50, %v1681_v51  ;;  %v2420_v36 = vld [vmem:[#allocation5 + $0x1b4] sm:$0xf0] }
  0x71   :  { %1390 = vmatpush.bf16.msra.mxu3 %v2124_v52  ;;  %v1808_v1 = vor.u32 %v2419_v57, %v1807_v56  ;;  %v1679_v43 = vld [vmem:[#allocation5 + $0x90] sm:$0xf]  ;;  %v2071_v37 = vld [vmem:[#allocation5 + $0x398] sm:$0xf] }
  0x72   :  { %1361 = vmatpush.bf16.msra.mxu1 %v1708_v3  ;;  %v2320_v3 = vor.u32 %v2547_v62, %v2319_v61  ;;  %v1935_v45 = vld [vmem:[#allocation5 + $0x290] sm:$0xf]  ;;  %v2375_v62 = vld [vmem:[#allocation5 + $0x54] sm:$0xf]  ;;  %v2476_v50 = vld [vmem:[#allocation5 + $0x374] sm:$0xf0] }
  0x73   :  { %v2451_v47 = vld [vmem:[#allocation5 + $0x2ac] sm:$0xf0] }
  0x74   :  { %1374 = vmatpush.bf16.msra.mxu2 %v1964_v4  ;;  %1349 = vmatpush.bf16.msra.mxu0 %v2184_v14  ;;  %v1775_v4 = vld [vmem:[#allocation5 + $0x150] sm:$0xf]  ;;  %v2032_v14 = vor.u32 %v2475_v8, %v2031_v6  ;;  %v1652_v8 = vor.u32 %v2375_v62, %v1649_v63  ;;  %v2468_v62 = vld [vmem:[#allocation5 + $0x334] sm:$0xf0] }
  0x75   :  { %1435 = vmatpush.bf16.msrb.mxu3 %v1844_v59  ;;  %v1776_v13 = vor.u32 %v2411_v5, %v1775_v4  ;;  %v2379_v56 = vld [vmem:[#allocation5 + $0x6c] sm:$0xf0] }
  0x76   :  { %1362 = vmatpush.bf16.msra.mxu1 %v1676_v15  ;;  %1391 = vmatmul.bf16.vlgmr.msra.gmra.mxu3 %v2704_v24  ;;  %v2288_v15 = vor.u32 %v2539_v10, %v2287_v9  ;;  %v1903_v57 = vld [vmem:[#allocation5 + $0x250] sm:$0xf]  ;;  %v2367_v10 = vld [vmem:[#allocation5 + $0x14] sm:$0xf] }
  0x77   :  { %v2443_v59 = vld [vmem:[#allocation5 + $0x26c] sm:$0xf0]  ;;  %v1620_v26 = vor.u32 %v2367_v10, %v1617_v11  ;;  %v2460_v10 = vld [vmem:[#allocation5 + $0x2f4] sm:$0xf0] }
  0x78   :  { %1375 = vmatpush.bf16.msra.mxu2 %v1932_v18  ;;  %1350 = vmatpush.bf16.msra.mxu0 %v2152_v29  ;;  %v1743_v18 = vld [vmem:[#allocation5 + $0x110] sm:$0xf]  ;;  %v2000_v29 = vor.u32 %v2467_v22, %v1999_v20  ;;  %v2428_v20 = vld [vmem:[#allocation5 + $0x1f4] sm:$0xf0] }
  0x79   :  { %1436 = vmatpush.bf16.msrb.mxu3 %v1812_v7  ;;  %v1744_v28 = vor.u32 %v2403_v19, %v1743_v18  ;;  %v2159_v60 = vld [vmem:[#allocation5 + $0x450] sm:$0xf]  ;;  %v2353_v18 = vld [vmem:[#allocation5 + $0x5f0] sm:$0xf0]  ;;  %v1847_v19 = vld [vmem:[#allocation5 + $0x1d8] sm:$0xf] }
  0x7a   :  { %1363 = vmatpush.bf16.msra.mxu1 %v1644_v32  ;;  %v2395_v32 = vld [vmem:[#allocation5 + $0xec] sm:$0xf0] }
  0x7b   :  { %v1712_v40 = vor.u32 %v2395_v32, %v1711_v31  ;;  %v2507_v61 = vld [vmem:[#allocation5 + $0x46c] sm:$0xf0]  ;;  %v2065_v31 = vld [vmem:[#allocation5 + $0x3b0] sm:$0xf0] }
  0x7c   :  { %1376 = vmatpush.bf16.msra.mxu2 %v1900_v33  ;;  %1351 = vmatpush.bf16.msra.mxu0 %v2120_v44  ;;  %v1967_v33 = vld [vmem:[#allocation5 + $0x2d0] sm:$0xf]  ;;  %v2160_v4 = vor.u32 %v2507_v61, %v2159_v60  ;;  %v2543_v32 = vld [vmem:[#allocation5 + $0x594] sm:$0xf]  ;;  %v2404_v60 = vld [vmem:[#allocation5 + $0x134] sm:$0xf0] }
  0x7d   :  { %1437 = vmatpush.bf16.msrb.mxu3 %v1780_v21  ;;  %v1968_v41 = vor.u32 %v2459_v35, %v1967_v33  ;;  %v2387_v44 = vld [vmem:[#allocation5 + $0xac] sm:$0xf0]  ;;  %v2104_v33 = vor.u32 %v2492_v25, %v2103_v23  ;;  %v1815_v35 = vld [vmem:[#allocation5 + $0x198] sm:$0xf] }
  0x7e   :  { %1364 = vmatpush.bf16.msra.mxu1 %v1612_v48  ;;  %v2191_v48 = vld [vmem:[#allocation5 + $0x490] sm:$0xf]  ;;  %v1680_v52 = vor.u32 %v2387_v44, %v1679_v43  ;;  %v2033_v43 = vld [vmem:[#allocation5 + $0x370] sm:$0xf0]  ;;  %v2007_v61 = vld [vmem:[#allocation5 + $0x318] sm:$0xf] }
  0x7f   :  { %1352 = vmatmul.bf16.vlgmr.msra.gmra.mxu0 %v2704_v24  ;;  %v1871_v5 = vld [vmem:[#allocation5 + $0x210] sm:$0xf]  ;;  %v2535_v44 = vld [vmem:[#allocation5 + $0x554] sm:$0xf]  ;;  %v1943_v23 = vld [vmem:[#allocation5 + $0x298] sm:$0xf] }
  0x80   :  { %1377 = vmatpush.bf16.msra.mxu2 %v1868_v49  ;;  %1396 = vmatpush.bf16.msrb.mxu0 %v1840_v53  ;;  %v2515_v49 = vld [vmem:[#allocation5 + $0x4ac] sm:$0xf0]  ;;  %v1936_v53 = vor.u32 %v2451_v47, %v1935_v45  ;;  %v2072_v45 = vor.u32 %v2484_v38, %v2071_v37  ;;  %v1783_v47 = vld [vmem:[#allocation5 + $0x158] sm:$0xf] }
  0x81   :  { %1365 = vmatmul.bf16.vlgmr.msra.gmra.mxu1 %v2700_v16  ;;  %1438 = vmatpush.bf16.msrb.mxu3 %v1748_v34  ;;  %v2435_v6 = vld [vmem:[#allocation5 + $0x22c] sm:$0xf0]  ;;  %v2321_v34 = vld [vmem:[#allocation5 + $0x5b0] sm:$0xf0]  ;;  %v2452_v25 = vld [vmem:[#allocation5 + $0x2b4] sm:$0xf0] }
  0x82   :  { %1409 = vmatpush.bf16.msrb.mxu1 %v2096_v54  ;;  %v2192_v54 = vor.u32 %v2515_v49, %v2191_v48  ;;  %v2127_v7 = vld [vmem:[#allocation5 + $0x410] sm:$0xf]  ;;  %v1872_v21 = vor.u32 %v2435_v6, %v1871_v5  ;;  %v2412_v48 = vld [vmem:[#allocation5 + $0x174] sm:$0xf0]  ;;  %v2008_v5 = vor.u32 %v2468_v62, %v2007_v61  ;;  %v2225_v6 = vld [vmem:[#allocation5 + $0x4f0] sm:$0xf0] }
  0x83   :  { %1378 = vmatmul.bf16.vlgmr.msra.gmra.mxu2 %v2702_v17  ;;  %v2499_v9 = vld [vmem:[#allocation5 + $0x42c] sm:$0xf0]  ;;  %v2039_v49 = vld [vmem:[#allocation5 + $0x358] sm:$0xf] }
  0x84   :  { %1422 = vmatpush.bf16.msrb.mxu2 %v2352_v55  ;;  %1397 = vmatpush.bf16.msrb.mxu0 %v1808_v1  ;;  %v1647_v55 = vld [vmem:[#allocation5 + $0x50] sm:$0xf]  ;;  %v2128_v22 = vor.u32 %v2499_v9, %v2127_v7  ;;  %v1719_v7 = vld [vmem:[#allocation5 + $0xd8] sm:$0xf] }
  0x85   :  { %1439 = vmatpush.bf16.msrb.mxu3 %v1716_v46  ;;  %v1648_v0 = vor.u32 %v2379_v56, %v1647_v55  ;;  %v1615_v1 = vld [vmem:[#allocation5 + $0x10] sm:$0xf]  ;;  %v2289_v46 = vld [vmem:[#allocation5 + $0x570] sm:$0xf0]  ;;  %v1975_v9 = vld [vmem:[#allocation5 + $0x2d8] sm:$0xf] }
  0x86   :  { %1410 = vmatpush.bf16.msrb.mxu1 %v2064_v2  ;;  %v2371_v2 = vld [vmem:[#allocation5 + $0x2c] sm:$0xf0]  ;;  %v2001_v55 = vld [vmem:[#allocation5 + $0x330] sm:$0xf0]  ;;  %v2444_v37 = vld [vmem:[#allocation5 + $0x274] sm:$0xf0] }
  0x87   :  { %v2527_v56 = vld [vmem:[#allocation5 + $0x514] sm:$0xf] }
  0x88   :  { %1423 = vmatpush.bf16.msrb.mxu2 %v2320_v3  ;;  %1398 = vmatpush.bf16.msrb.mxu0 %v1776_v13  ;;  %v1904_v3 = vor.u32 %v2443_v59, %v1903_v57  ;;  %v2097_v13 = vld [vmem:[#allocation5 + $0x3f0] sm:$0xf0]  ;;  %v2040_v57 = vor.u32 %v2476_v50, %v2039_v49  ;;  %v1751_v59 = vld [vmem:[#allocation5 + $0x118] sm:$0xf] }
  0x89   :  { %1440 = vmatpush.bf16.msrb.mxu3 %v1684_v58  ;;  %v2100_v27 = vor.u32 %v2487_v12, %v2097_v13  ;;  %v2257_v58 = vld [vmem:[#allocation5 + $0x530] sm:$0xf0]  ;;  %v2436_v49 = vld [vmem:[#allocation5 + $0x234] sm:$0xf0] }
  0x8a   :  { %1411 = vmatpush.bf16.msrb.mxu1 %v2032_v14  ;;  %v2551_v14 = vld [vmem:[#allocation5 + $0x5d4] sm:$0xf]  ;;  %v2359_v50 = vld [vmem:[#allocation5 + $0x5d8] sm:$0xf] }
  0x8c   :  { %1424 = vmatpush.bf16.msrb.mxu2 %v2288_v15  ;;  %1399 = vmatpush.bf16.msrb.mxu0 %v1744_v28  ;;  %v1616_v15 = vor.u32 %v2371_v2, %v1615_v1  ;;  %v2356_v28 = vor.u32 %v2551_v14, %v2353_v18  ;;  %v1752_v1 = vor.u32 %v2404_v60, %v1751_v59  ;;  %v2455_v2 = vld [vmem:[#allocation5 + $0x2d4] sm:$0xf]  ;;  %v2552_v59 = vld [vmem:[#allocation5 + $0x5dc] sm:$0xf] }
  0x8d   :  { %1441 = vmatpush.bf16.msrb.mxu3 %v1652_v8  ;;  %v2396_v8 = vld [vmem:[#allocation5 + $0xf4] sm:$0xf0]  ;;  %v2447_v14 = vld [vmem:[#allocation5 + $0x294] sm:$0xf]  ;;  %v2361_v60 = vld [vmem:[#allocation5 + $0x5f8] sm:$0xf0] }
  0x8e   :  { %1412 = vmatpush.bf16.msrb.mxu1 %v2000_v29  ;;  %v1848_v29 = vor.u32 %v2428_v20, %v1847_v19  ;;  %v1720_v13 = vor.u32 %v2396_v8, %v1719_v7  ;;  %v2511_v18 = vld [vmem:[#allocation5 + $0x494] sm:$0xf]  ;;  %v1976_v19 = vor.u32 %v2460_v10, %v1975_v9  ;;  %v2073_v7 = vld [vmem:[#allocation5 + $0x3b8] sm:$0xf0] }
  0x8f   :  { %v2193_v20 = vld [vmem:[#allocation5 + $0x4b0] sm:$0xf0]  ;;  %v2544_v8 = vld [vmem:[#allocation5 + $0x59c] sm:$0xf] }
  0x90   :  { %1425 = vmatpush.bf16.msrb.mxu2 %v2256_v30  ;;  %1400 = vmatpush.bf16.msrb.mxu0 %v1712_v40  ;;  %v2479_v30 = vld [vmem:[#allocation5 + $0x394] sm:$0xf]  ;;  %v2324_v40 = vor.u32 %v2543_v32, %v2321_v34  ;;  %v1944_v32 = vor.u32 %v2452_v25, %v1943_v23  ;;  %v1655_v34 = vld [vmem:[#allocation5 + $0x58] sm:$0xf]  ;;  %v2329_v9 = vld [vmem:[#allocation5 + $0x5b8] sm:$0xf0] }
  0x91   :  { %1442 = vmatpush.bf16.msrb.mxu3 %v1620_v26  ;;  %v2068_v39 = vor.u32 %v2479_v30, %v2065_v31  ;;  %v1905_v30 = vld [vmem:[#allocation5 + $0x270] sm:$0xf0]  ;;  %v2297_v23 = vld [vmem:[#allocation5 + $0x578] sm:$0xf0] }
  0x92   :  { %1413 = vmatpush.bf16.msrb.mxu1 %v1968_v41  ;;  %v1816_v41 = vor.u32 %v2420_v36, %v1815_v35  ;;  %v2503_v31 = vld [vmem:[#allocation5 + $0x454] sm:$0xf]  ;;  %v2380_v35 = vld [vmem:[#allocation5 + $0x74] sm:$0xf0] }
  0x93   :  { %v1911_v36 = vld [vmem:[#allocation5 + $0x258] sm:$0xf] }
  0x94   :  { %1426 = vmatpush.bf16.msrb.mxu2 %v2224_v42  ;;  %1401 = vmatpush.bf16.msrb.mxu0 %v1680_v52  ;;  %v2471_v42 = vld [vmem:[#allocation5 + $0x354] sm:$0xf]  ;;  %v2292_v52 = vor.u32 %v2535_v44, %v2289_v46  ;;  %v1912_v46 = vor.u32 %v2444_v37, %v1911_v36  ;;  %v2265_v36 = vld [vmem:[#allocation5 + $0x538] sm:$0xf0] }
  0x95   :  { %1487 = vmatpush.bf16.msra.mxu3 %v2104_v33  ;;  %v2036_v51 = vor.u32 %v2471_v42, %v2033_v43  ;;  %v2161_v33 = vld [vmem:[#allocation5 + $0x470] sm:$0xf0]  ;;  %v1656_v42 = vor.u32 %v2380_v35, %v1655_v34  ;;  %v2009_v34 = vld [vmem:[#allocation5 + $0x338] sm:$0xf0] }
  0x96   :  { %1414 = vmatpush.bf16.msrb.mxu1 %v1936_v53  ;;  %1443 = vmatmul.bf16.vlgmr.msrb.gmra.mxu3 %v2700_v16  ;;  %v1784_v53 = vor.u32 %v2412_v48, %v1783_v47  ;;  %v2495_v43 = vld [vmem:[#allocation5 + $0x414] sm:$0xf]  ;;  %v2372_v47 = vld [vmem:[#allocation5 + $0x34] sm:$0xf0]  ;;  %v2528_v35 = vld [vmem:[#allocation5 + $0x51c] sm:$0xf] }
  0x97   :  { %v2129_v44 = vld [vmem:[#allocation5 + $0x430] sm:$0xf0]  ;;  %v1879_v48 = vld [vmem:[#allocation5 + $0x218] sm:$0xf] }
  0x98   :  { %1427 = vmatpush.bf16.msrb.mxu2 %v2192_v54  ;;  %1402 = vmatpush.bf16.msrb.mxu0 %v1648_v0  ;;  %v2463_v54 = vld [vmem:[#allocation5 + $0x314] sm:$0xf]  ;;  %v2260_v0 = vor.u32 %v2527_v56, %v2257_v58  ;;  %v2105_v56 = vld [vmem:[#allocation5 + $0x3f8] sm:$0xf0]  ;;  %v1880_v61 = vor.u32 %v2436_v49, %v1879_v48 }
  0x99   :  { %1488 = vmatpush.bf16.msra.mxu3 %v2072_v45  ;;  %v2004_v63 = vor.u32 %v2463_v54, %v2001_v55  ;;  %v1623_v45 = vld [vmem:[#allocation5 + $0x18] sm:$0xf]  ;;  %v1849_v54 = vld [vmem:[#allocation5 + $0x1f8] sm:$0xf0] }
  0x9a   :  { %1415 = vmatpush.bf16.msrb.mxu1 %v1904_v3  ;;  %v1969_v3 = vld [vmem:[#allocation5 + $0x2f0] sm:$0xf0]  ;;  %v2488_v55 = vld [vmem:[#allocation5 + $0x3dc] sm:$0xf]  ;;  %v1624_v58 = vor.u32 %v2372_v47, %v1623_v45 }
  0x9b   :  { %v1972_v11 = vor.u32 %v2455_v2, %v1969_v3  ;;  %v2548_v2 = vld [vmem:[#allocation5 + $0x5b4] sm:$0xf0]  ;;  %v2416_v3 = vld [vmem:[#allocation5 + $0x19c] sm:$0xf] }
  0x9c   :  { %1428 = vmatpush.bf16.msrb.mxu2 %v2160_v4  ;;  %1403 = vmatpush.bf16.msrb.mxu0 %v1616_v15  ;;  %v2519_v4 = vld [vmem:[#allocation5 + $0x4d4] sm:$0xf]  ;;  %v2456_v45 = vld [vmem:[#allocation5 + $0x2dc] sm:$0xf] }
  0x9d   :  { %1489 = vmatpush.bf16.msra.mxu3 %v2040_v57  ;;  %v2228_v12 = vor.u32 %v2519_v4, %v2225_v6  ;;  %v1937_v15 = vld [vmem:[#allocation5 + $0x2b0] sm:$0xf0]  ;;  %v2132_v57 = vor.u32 %v2495_v43, %v2129_v44  ;;  %v2364_v4 = vor.u32 %v2552_v59, %v2361_v60  ;;  %v2480_v6 = vld [vmem:[#allocation5 + $0x39c] sm:$0xf]  ;;  %v2268_v43 = vor.u32 %v2528_v35, %v2265_v36 }
  0x9e   :  { %1416 = vmatpush.bf16.msrb.mxu1 %v1872_v21  ;;  %v1687_v21 = vld [vmem:[#allocation5 + $0x98] sm:$0xf]  ;;  %v1940_v26 = vor.u32 %v2447_v14, %v1937_v15  ;;  %v2408_v15 = vld [vmem:[#allocation5 + $0x15c] sm:$0xf] }
  0x9f   :  { %1404 = vmatmul.bf16.vlgmr.msrb.gmra.mxu0 %v2700_v16  ;;  %v2540_v14 = vld [vmem:[#allocation5 + $0x574] sm:$0xf0]  ;;  %v1721_v44 = vld [vmem:[#allocation5 + $0xf8] sm:$0xf0] }
  0xa0   :  { %1429 = vmatpush.bf16.msrb.mxu2 %v2128_v22  ;;  %1448 = vmatpush.bf16.msra.mxu0 %v2100_v27  ;;  %v2388_v22 = vld [vmem:[#allocation5 + $0xb4] sm:$0xf0]  ;;  %v2196_v27 = vor.u32 %v2511_v18, %v2193_v20  ;;  %v2332_v18 = vor.u32 %v2544_v8, %v2329_v9  ;;  %v2472_v20 = vld [vmem:[#allocation5 + $0x35c] sm:$0xf] }
  0xa1   :  { %1417 = vmatmul.bf16.vlgmr.msrb.gmra.mxu1 %v2702_v17  ;;  %1490 = vmatpush.bf16.msra.mxu3 %v2008_v5  ;;  %v1817_v5 = vld [vmem:[#allocation5 + $0x1b8] sm:$0xf0] }
  0xa2   :  { %1461 = vmatpush.bf16.msra.mxu1 %v2356_v28  ;;  %v1688_v28 = vor.u32 %v2388_v22, %v1687_v21  ;;  %v2041_v21 = vld [vmem:[#allocation5 + $0x378] sm:$0xf0] }
  0xa3   :  { %1430 = vmatmul.bf16.vlgmr.msrb.gmra.mxu2 %v2704_v24  ;;  %v2536_v22 = vld [vmem:[#allocation5 + $0x55c] sm:$0xf] }
  0xa4   :  { %1474 = vmatpush.bf16.msra.mxu2 %v1848_v29  ;;  %1449 = vmatpush.bf16.msra.mxu0 %v2068_v39  ;;  %v2439_v29 = vld [vmem:[#allocation5 + $0x254] sm:$0xf]  ;;  %v2520_v47 = vld [vmem:[#allocation5 + $0x4dc] sm:$0xf] }
  0xa5   :  { %1491 = vmatpush.bf16.msra.mxu3 %v1976_v19  ;;  %v1908_v38 = vor.u32 %v2439_v29, %v1905_v30  ;;  %v2431_v39 = vld [vmem:[#allocation5 + $0x214] sm:$0xf]  ;;  %v1785_v19 = vld [vmem:[#allocation5 + $0x178] sm:$0xf0]  ;;  %v2532_v29 = vld [vmem:[#allocation5 + $0x534] sm:$0xf0] }
  0xa6   :  { %1462 = vmatpush.bf16.msra.mxu1 %v2324_v40  ;;  %v1873_v40 = vld [vmem:[#allocation5 + $0x230] sm:$0xf0]  ;;  %v2400_v30 = vld [vmem:[#allocation5 + $0x11c] sm:$0xf] }
  0xa7   :  { %v2233_v48 = vld [vmem:[#allocation5 + $0x4f8] sm:$0xf0] }
  0xa8   :  { %1475 = vmatpush.bf16.msra.mxu2 %v1816_v41  ;;  %1450 = vmatpush.bf16.msra.mxu0 %v2036_v51  ;;  %v2164_v41 = vor.u32 %v2503_v31, %v2161_v33  ;;  %v2556_v51 = vld [vmem:[#allocation5 + $0x5f4] sm:$0xf0]  ;;  %v2300_v31 = vor.u32 %v2536_v22, %v2297_v23  ;;  %v2464_v33 = vld [vmem:[#allocation5 + $0x31c] sm:$0xf] }
  0xa9   :  { %1492 = vmatpush.bf16.msra.mxu3 %v1944_v32  ;;  %v2360_v62 = vor.u32 %v2556_v51, %v2359_v50  ;;  %v1753_v32 = vld [vmem:[#allocation5 + $0x138] sm:$0xf0] }
  0xaa   :  { %1463 = vmatpush.bf16.msra.mxu1 %v2292_v52  ;;  %v2424_v52 = vld [vmem:[#allocation5 + $0x1dc] sm:$0xf] }
  0xab   :  { %v2512_v59 = vld [vmem:[#allocation5 + $0x49c] sm:$0xf] }
  0xac   :  { %1476 = vmatpush.bf16.msra.mxu2 %v1784_v53  ;;  %1451 = vmatpush.bf16.msra.mxu0 %v2004_v63  ;;  %v1876_v53 = vor.u32 %v2431_v39, %v1873_v40  ;;  %v1852_v63 = vor.u32 %v2424_v52, %v1849_v54  ;;  %v2012_v39 = vor.u32 %v2464_v33, %v2009_v34  ;;  %v2231_v40 = vld [vmem:[#allocation5 + $0x4d8] sm:$0xf]  ;;  %v2384_v54 = vld [vmem:[#allocation5 + $0x9c] sm:$0xf] }
  0xad   :  { %1493 = vmatpush.bf16.msra.mxu3 %v1912_v46  ;;  %v1977_v46 = vld [vmem:[#allocation5 + $0x2f8] sm:$0xf0]  ;;  %v2199_v52 = vld [vmem:[#allocation5 + $0x498] sm:$0xf] }
  0xae   :  { %1464 = vmatpush.bf16.msra.mxu1 %v2260_v0  ;;  %v2108_v0 = vor.u32 %v2488_v55, %v2105_v56  ;;  %v1980_v51 = vor.u32 %v2456_v45, %v1977_v46  ;;  %v2236_v55 = vor.u32 %v2520_v47, %v2233_v48  ;;  %v1689_v56 = vld [vmem:[#allocation5 + $0xb8] sm:$0xf0] }
  0xaf   :  { %v2201_v60 = vld [vmem:[#allocation5 + $0x4b8] sm:$0xf0] }
  0xb0   :  { %1477 = vmatpush.bf16.msra.mxu2 %v1752_v1  ;;  %1452 = vmatpush.bf16.msra.mxu0 %v1972_v11  ;;  %v2327_v1 = vld [vmem:[#allocation5 + $0x598] sm:$0xf]  ;;  %v1820_v11 = vor.u32 %v2416_v3, %v1817_v5  ;;  %v2204_v5 = vor.u32 %v2512_v59, %v2201_v60  ;;  %v1913_v8 = vld [vmem:[#allocation5 + $0x278] sm:$0xf0] }
  0xb1   :  { %1494 = vmatpush.bf16.msra.mxu3 %v1880_v61  ;;  %v2328_v10 = vor.u32 %v2548_v2, %v2327_v1  ;;  %v2167_v2 = vld [vmem:[#allocation5 + $0x458] sm:$0xf]  ;;  %v2504_v9 = vld [vmem:[#allocation5 + $0x45c] sm:$0xf] }
  0xb2   :  { %1465 = vmatpush.bf16.msra.mxu1 %v2228_v12  ;;  %v2076_v12 = vor.u32 %v2480_v6, %v2073_v7  ;;  %v2508_v3 = vld [vmem:[#allocation5 + $0x474] sm:$0xf0]  ;;  %v1657_v6 = vld [vmem:[#allocation5 + $0x78] sm:$0xf0] }
  0xb3   :  { %v2440_v7 = vld [vmem:[#allocation5 + $0x25c] sm:$0xf] }
  0xb4   :  { %1478 = vmatpush.bf16.msra.mxu2 %v1720_v13  ;;  %1453 = vmatpush.bf16.msra.mxu0 %v1940_v26  ;;  %v2295_v13 = vld [vmem:[#allocation5 + $0x558] sm:$0xf]  ;;  %v1788_v26 = vor.u32 %v2408_v15, %v1785_v19  ;;  %v1881_v22 = vld [vmem:[#allocation5 + $0x238] sm:$0xf0] }
  0xb5   :  { %1539 = vmatpush.bf16.msrb.mxu3 %v2364_v4  ;;  %v2296_v25 = vor.u32 %v2540_v14, %v2295_v13  ;;  %v2376_v4 = vld [vmem:[#allocation5 + $0x5c] sm:$0xf]  ;;  %v1916_v13 = vor.u32 %v2440_v7, %v1913_v8  ;;  %v2135_v14 = vld [vmem:[#allocation5 + $0x418] sm:$0xf] }
  0xb6   :  { %1466 = vmatpush.bf16.msra.mxu1 %v2196_v27  ;;  %1495 = vmatmul.bf16.vlgmr.msra.gmra.mxu3 %v2702_v17  ;;  %v2044_v27 = vor.u32 %v2472_v20, %v2041_v21  ;;  %v2500_v15 = vld [vmem:[#allocation5 + $0x434] sm:$0xf0]  ;;  %v1625_v20 = vld [vmem:[#allocation5 + $0x38] sm:$0xf0] }
  0xb7   :  { %v2432_v21 = vld [vmem:[#allocation5 + $0x21c] sm:$0xf] }
  0xb8   :  { %1479 = vmatpush.bf16.msra.mxu2 %v1688_v28  ;;  %1454 = vmatpush.bf16.msra.mxu0 %v1908_v38  ;;  %v2263_v28 = vld [vmem:[#allocation5 + $0x518] sm:$0xf]  ;;  %v1756_v38 = vor.u32 %v2400_v30, %v1753_v32  ;;  %v1884_v32 = vor.u32 %v2432_v21, %v1881_v22 }
  0xb9   :  { %1540 = vmatpush.bf16.msrb.mxu3 %v2332_v18  ;;  %v2264_v37 = vor.u32 %v2532_v29, %v2263_v28  ;;  %v2368_v18 = vld [vmem:[#allocation5 + $0x1c] sm:$0xf]  ;;  %v2136_v29 = vor.u32 %v2500_v15, %v2135_v14 }
  0xba   :  { %1467 = vmatpush.bf16.msra.mxu1 %v2164_v41  ;;  %v2524_v41 = vld [vmem:[#allocation5 + $0x4f4] sm:$0xf0] }
  0xbb   :  { %v2232_v49 = vor.u32 %v2524_v41, %v2231_v40 }
  0xbc   :  { %1480 = vmatpush.bf16.msra.mxu2 %v1656_v42  ;;  %1455 = vmatpush.bf16.msra.mxu0 %v1876_v53  ;;  %v2392_v42 = vld [vmem:[#allocation5 + $0xdc] sm:$0xf]  ;;  %v2516_v53 = vld [vmem:[#allocation5 + $0x4b4] sm:$0xf0]  ;;  %v2726_v61 = vpop.f32.mrf.mxu0 }
  0xbd   :  { %1541 = vmatpush.bf16.msrb.mxu3 %v2300_v31  ;;  %v1724_v50 = vor.u32 %v2392_v42, %v1721_v44  ;;  %v1628_v31 = vor.u32 %v2368_v18, %v1625_v20  ;;  %v2734_v44 = vld [vmem:[#allocation7] sm:$0xff] }
  0xbe   :  { %1468 = vmatpush.bf16.msra.mxu1 %v2132_v57  ;;  %v2448_v57 = vld [vmem:[#allocation5 + $0x29c] sm:$0xf]  ;;  %v265_v45 = vperm.slane %v2734_v44, 1  ;;  %v266_v46 = vperm.slane %v2734_v44, 2  ;;  %v268_v8 = vperm.slane %v2734_v44, 4 }
  0xbf   :  { %1456 = vmatmul.bf16.vlgmr.msra.gmra.mxu0 %v2702_v17  ;;  %v1288_v28 = vpop.f32.mrf.mxu3 }
  0xc0   :  { %1481 = vmatpush.bf16.msra.mxu2 %v1624_v58  ;;  %1500 = vmatpush.bf16.msrb.mxu0 %v2360_v62  ;;  %v1945_v58 = vld [vmem:[#allocation5 + $0x2b8] sm:$0xf0]  ;;  %v2200_v62 = vor.u32 %v2516_v53, %v2199_v52  ;;  %v1289_v47 = vadd.f32 %v1288_v28, %v265_v45 }
  0xc1   :  { %1469 = vmatmul.bf16.vlgmr.msra.gmra.mxu1 %v2704_v24  ;;  %1542 = vmatpush.bf16.msrb.mxu3 %v2268_v43  ;;  %v1948_v1 = vor.u32 %v2448_v57, %v1945_v58 }
  0xc2   :  { %1513 = vmatpush.bf16.msrb.mxu1 %v1852_v63  ;;  %v2728_v63 = vpop.f32.mrf.mxu1 }
  0xc3   :  { %1482 = vmatmul.bf16.vlgmr.msra.gmra.mxu2 %v2700_v16 }
  0xc4   :  { %1526 = vmatpush.bf16.msrb.mxu2 %v2108_v0  ;;  %1501 = vmatpush.bf16.msrb.mxu0 %v2328_v10  ;;  %v1692_v0 = vor.u32 %v2384_v54, %v1689_v56  ;;  %v2169_v10 = vld [vmem:[#allocation5 + $0x478] sm:$0xf0] }
  0xc5   :  { %1543 = vmatpush.bf16.msrb.mxu3 %v2236_v55  ;;  %v2172_v19 = vor.u32 %v2504_v9, %v2169_v10 }
  0xc6   :  { %1514 = vmatpush.bf16.msrb.mxu1 %v1820_v11  ;;  %v2168_v11 = vor.u32 %v2508_v3, %v2167_v2  ;;  %v1275_v23 = vpop.f32.mrf.mxu2 }
  0xc7   :  { %v1290_v35 = vpop.f32.mrf.mxu3 }
  0xc8   :  { %1527 = vmatpush.bf16.msrb.mxu2 %v2076_v12  ;;  %1502 = vmatpush.bf16.msrb.mxu0 %v2296_v25  ;;  %v1660_v12 = vor.u32 %v2376_v4, %v1657_v6  ;;  %v2496_v25 = vld [vmem:[#allocation5 + $0x41c] sm:$0xf] }
  0xc9   :  { %1544 = vmatpush.bf16.msrb.mxu3 %v2204_v5 }
  0xca   :  { %1515 = vmatpush.bf16.msrb.mxu1 %v1788_v26  ;;  %v2137_v26 = vld [vmem:[#allocation5 + $0x438] sm:$0xf0]  ;;  %v1264_v30 = vpop.f32.mrf.mxu1 }
  0xcb   :  { %v2140_v33 = vor.u32 %v2496_v25, %v2137_v26  ;;  %v269_v30 = vperm.slane %v2734_v44, 5 }
  0xcc   :  { %1528 = vmatpush.bf16.msrb.mxu2 %v2044_v27  ;;  %1503 = vmatpush.bf16.msrb.mxu0 %v2264_v37  ;;  %v1251_v27 = vpop.f32.mrf.mxu0 }
  0xcd   :  { %1545 = vmatpush.bf16.msrb.mxu3 %v2172_v19 }
  0xce   :  { %1516 = vmatpush.bf16.msrb.mxu1 %v1756_v38  ;;  %v1277_v34 = vpop.f32.mrf.mxu2 }
  0xcf   :  { %v271_v34 = vperm.slane %v2734_v44, 7 }
  0xd0   :  { %1529 = vmatpush.bf16.msrb.mxu2 %v2012_v39  ;;  %1504 = vmatpush.bf16.msrb.mxu0 %v2232_v49 }
  0xd1   :  { %1546 = vmatpush.bf16.msrb.mxu3 %v2140_v33 }
  0xd2   :  { %1517 = vmatpush.bf16.msrb.mxu1 %v1724_v50 }
  0xd4   :  { %1530 = vmatpush.bf16.msrb.mxu2 %v1980_v51  ;;  %1505 = vmatpush.bf16.msrb.mxu0 %v2200_v62 }
  0xd5   :  { %1547 = vmatmul.bf16.vlgmr.msrb.gmra.mxu3 %v2704_v24 }
  0xd6   :  { %1518 = vmatpush.bf16.msrb.mxu1 %v1692_v0 }
  0xd8   :  { %1531 = vmatpush.bf16.msrb.mxu2 %v1948_v1  ;;  %1506 = vmatpush.bf16.msrb.mxu0 %v2168_v11 }
  0xd9   :  { %v1340_v39 = vpop.f32.mrf.mxu3 }
  0xda   :  { %1519 = vmatpush.bf16.msrb.mxu1 %v1660_v12 }
  0xdc   :  { %1532 = vmatpush.bf16.msrb.mxu2 %v1916_v13  ;;  %1507 = vmatpush.bf16.msrb.mxu0 %v2136_v29  ;;  %v1301_v36 = vpop.f32.mrf.mxu0 }
  0xdd   :  { %v1302_v49 = vadd.f32 %v1301_v36, %v1289_v47 }
  0xde   :  { %1520 = vmatpush.bf16.msrb.mxu1 %v1628_v31  ;;  %v1314_v37 = vpop.f32.mrf.mxu1 }
  0xdf   :  { %1508 = vmatmul.bf16.vlgmr.msrb.gmra.mxu0 %v2704_v24  ;;  %v267_v24 = vperm.slane %v2734_v44, 3  ;;  %v1315_v55 = vadd.f32 %v1314_v37, %v1302_v49 }
  0xe0   :  { %1533 = vmatpush.bf16.msrb.mxu2 %v1884_v32  ;;  %v270_v32 = vperm.slane %v2734_v44, 6 }
  0xe1   :  { %1521 = vmatmul.bf16.vlgmr.msrb.gmra.mxu1 %v2700_v16  ;;  %v1342_v43 = vpop.f32.mrf.mxu3  ;;  %v264_v16 = vperm.slane %v2734_v44, 0  ;;  %v1560_v62 = vrot.slane %v1315_v55, 6 }
  0xe3   :  { %1534 = vmatmul.bf16.vlgmr.msrb.gmra.mxu2 %v2702_v17  ;;  %v1250_v48 = vadd.f32 %v2726_v61, %v264_v16 }
  0xe4   :  { %v1303_v40 = vpop.f32.mrf.mxu0 }
  0xe5   :  { %v1263_v54 = vadd.f32 %v2728_v63, %v1250_v48 }
  0xe6   :  { %v1327_v38 = vpop.f32.mrf.mxu2  ;;  %v1316_v41 = vpop.f32.mrf.mxu1 }
  0xe7   :  { %v1328_v17 = vadd.f32 %v1327_v38, %v266_v46  ;;  %v1276_v60 = vadd.f32 %v1275_v23, %v1263_v54 }
  0xe9   :  { %v1341_v50 = vadd.f32 %v1340_v39, %v1328_v17  ;;  %v1567_v4 = vsel %vm1566_vm0, %v1276_v60, %v1560_v62 }
  0xee   :  { %v1329_v42 = vpop.f32.mrf.mxu2 }
  0xf9   :  { %v1392_v59 = vpop.f32.mrf.mxu3 }
  0xfc   :  { %v1353_v53 = vpop.f32.mrf.mxu0 }
  0xfd   :  { %v1354_v56 = vadd.f32 %v1353_v53, %v1341_v50 }
  0xfe   :  { %v1366_v51 = vpop.f32.mrf.mxu1 }
  0xff   :  { %v1367_v52 = vadd.f32 %v1366_v51, %v267_v24  ;;  %v1561_v0 = vrot.slane %v1354_v56, 4 }
 0x101   :  { %v1394_v7 = vpop.f32.mrf.mxu3 }
 0x104   :  { %v1355_v3 = vpop.f32.mrf.mxu0 }
 0x106   :  { %v1379_v57 = vpop.f32.mrf.mxu2  ;;  %v1368_v2 = vpop.f32.mrf.mxu1 }
 0x107   :  { %v1380_v58 = vadd.f32 %v1379_v57, %v1367_v52 }
 0x109   :  { %v1393_v1 = vadd.f32 %v1392_v59, %v1380_v58 }
 0x10b   :  { %v1562_v61 = vrot.slane %v1393_v1, 2 }
 0x10d   :  { %v1569_v5 = vsel %vm1568_vm1, %v1561_v0, %v1562_v61 }
 0x10e   :  { %v1381_v63 = vpop.f32.mrf.mxu2  ;;  %v1571_v6 = vsel %vm1570_vm2, %v1567_v4, %v1569_v5 }
 0x10f   :  { %1577 = vst [vmem:[#allocation8] sm:$0xff] %v1571_v6 }
 0x119   :  { %v1444_v15 = vpop.f32.mrf.mxu3 }
 0x11a   :  { %v1445_v31 = vadd.f32 %v1444_v15, %v269_v30 }
 0x11c   :  { %v1405_v9 = vpop.f32.mrf.mxu0 }
 0x11d   :  { %v1406_v10 = vadd.f32 %v1405_v9, %v268_v8 }
 0x11e   :  { %v1418_v11 = vpop.f32.mrf.mxu1 }
 0x11f   :  { %v1419_v12 = vadd.f32 %v1418_v11, %v1406_v10 }
 0x121   :  { %v1446_v20 = vpop.f32.mrf.mxu3 }
 0x124   :  { %v1407_v14 = vpop.f32.mrf.mxu0 }
 0x126   :  { %v1431_v13 = vpop.f32.mrf.mxu2  ;;  %v1420_v18 = vpop.f32.mrf.mxu1 }
 0x127   :  { %v1432_v47 = vadd.f32 %v1431_v13, %v1419_v12 }
 0x12e   :  { %v1433_v19 = vpop.f32.mrf.mxu2 }
 0x139   :  { %v1496_v25 = vpop.f32.mrf.mxu3 }
 0x13c   :  { %v1457_v21 = vpop.f32.mrf.mxu0 }
 0x13d   :  { %v1458_v36 = vadd.f32 %v1457_v21, %v1445_v31 }
 0x13e   :  { %v1470_v22 = vpop.f32.mrf.mxu1 }
 0x13f   :  { %v1471_v39 = vadd.f32 %v1470_v22, %v1458_v36 }
 0x141   :  { %v1498_v29 = vpop.f32.mrf.mxu3  ;;  %v1563_v17 = vrot.slane %v1471_v39, 6 }
 0x143   :  { %v1572_v49 = vsel %vm1566_vm0, %v1432_v47, %v1563_v17 }
 0x144   :  { %v1459_v26 = vpop.f32.mrf.mxu0 }
 0x146   :  { %v1483_v23 = vpop.f32.mrf.mxu2  ;;  %v1472_v27 = vpop.f32.mrf.mxu1 }
 0x147   :  { %v1484_v37 = vadd.f32 %v1483_v23, %v270_v32 }
 0x149   :  { %v1497_v40 = vadd.f32 %v1496_v25, %v1484_v37 }
 0x14e   :  { %v1485_v28 = vpop.f32.mrf.mxu2 }
 0x158   :  { %v1548_v45 = vpop.f32.mrf.mxu3 }
 0x15c   :  { %v1509_v33 = vpop.f32.mrf.mxu0 }
 0x15d   :  { %v1510_v42 = vadd.f32 %v1509_v33, %v1497_v40 }
 0x15e   :  { %v1522_v35 = vpop.f32.mrf.mxu1 }
 0x15f   :  { %v1523_v38 = vadd.f32 %v1522_v35, %v271_v34  ;;  %v1564_v44 = vrot.slane %v1510_v42, 4 }
 0x160   :  { %v1550_v53 = vpop.f32.mrf.mxu3 }
 0x164   :  { %v1511_v46 = vpop.f32.mrf.mxu0 }
 0x166   :  { %v1535_v41 = vpop.f32.mrf.mxu2  ;;  %v1524_v16 = vpop.f32.mrf.mxu1 }
 0x167   :  { %v1536_v43 = vadd.f32 %v1535_v41, %v1523_v38 }
 0x169   :  { %v1549_v24 = vadd.f32 %v1548_v45, %v1536_v43 }
 0x16b   :  { %v1565_v48 = vrot.slane %v1549_v24, 2 }
 0x16d   :  { %v1573_v50 = vsel %vm1568_vm1, %v1564_v44, %v1565_v48 }
 0x16e   :  { %v1537_v51 = vpop.f32.mrf.mxu2  ;;  %v1574_v52 = vsel %vm1570_vm2, %v1572_v49, %v1573_v50 }
 0x16f   :  { %1578 = vst [vmem:[#allocation8 + $0x8] sm:$0xff] %v1574_v52 }
 0x170   :  { %1589 = dma.vmem_to_hbm [thread:$0]  %s1585_s2, 256, %s1587_s30, [#allocation4]  }
 0x171   :  { %2663 = dma.done.wait [#allocation4], 256  }
 0x172   :  { %2664 = vsyncadd [#allocation4], 4294967040 }
 0x173   :  { %1594 = vsyncpa [#allocation3], 1 }
 0x174   :  { %1595 = vsyncpa [#allocation6], 1 }
 0x175   :  { %1596 = vsyncpa [#allocation4], 1 }

</bundles_post_ra>
